<compile_context>
chip_gen: v6e
topology: v6e:2x2x1
jax: 0.10.0
libtpu: 0.0.40
codegen_flags: <defaults>
</compile_context>

<pallas_src>
import jax
import jax.numpy as jnp
from jax import lax
from jax.experimental import pallas as pl
from jax.experimental.pallas import tpu as pltpu

# --- static model hyper-parameters (match PyTorch defaults / small latent) ---
MOTIF_LENGTH = 11
AA_NUMBER = 20
LATENT_N = 16
HIDDEN = 500
HIDDEN_PAD = 512                          # 500 padded to 128-lane boundary
IN_FEATURES = MOTIF_LENGTH * AA_NUMBER    # 220
IN_PAD = 256                              # x / w1-rows padded to 256 (lane + MXU-K aligned)
OUT_FEATURES = MOTIF_LENGTH * AA_NUMBER   # 220 (fused head width)
OUT_PAD = 256                             # fused head padded to 256 lanes
LAT_OUT = 128                             # encoder output slab width (mu|log_var|KLD|0)
HEADS_PAD = 16                            # 11 heads padded to 16 (sublane aligned)
TB_MAX = 1024                             # max batch tile

_NEG_SLOPE = 0.01  # F.leaky_relu default


def _leaky_relu(v):
    return jnp.where(v > 0, v, _NEG_SLOPE * v)


def _vae_kernel(
    # ----- inputs -----
    x_ref,            # (TB, 256) bf16  (lanes >= 220 are zero)
    w1_ref, b1_ref,   # (256, 512) bf16, (1, 512) f32
    w2_ref, b2_ref,   # (512, 512) bf16, (1, 512) f32
    w3_ref, b3_ref,   # (512, 128) bf16, (1, 128) f32
    w4_ref, b4_ref,   # (16, 512)  bf16, (1, 512) f32
    w5_ref, b5_ref,   # (512, 512) bf16, (1, 512) f32
    wo_ref, bo_ref,   # (512, 256) bf16, (1, 256) f32  (fused 11 heads, zero-padded)
    st_ref,           # (256, 16) f32  segment-sum matrix (block-diag transposed)
    sb_ref,           # (16, 256) f32  per-head -> lane broadcast matrix
    pad1_ref,         # (1, 16)  f32   1.0 on padded head slots, else 0.0
    eps_ref,          # (1, 16)  f32   shared N(0,1) noise (torch.randn(latent_n))
    # ----- outputs -----
    enc_ref,          # (TB, 128) f32: mu(0:16) | log_var(16:32) | KLD(32) | zeros
    logp_ref,         # (TB, 256) f32: fused per-position log_softmax (lanes>=220 junk)
):
    f32 = jnp.float32

    def mm(a, w_ref, b_ref):
        # bf16 MXU matmul with f32 accumulation; bias add in f32.
        return jnp.dot(a.astype(w_ref.dtype), w_ref[...],
                       preferred_element_type=f32) + b_ref[...]

    # ---------- encoder ----------
    h = _leaky_relu(mm(x_ref[...], w1_ref, b1_ref))
    h = _leaky_relu(mm(h, w2_ref, b2_ref))
    h3 = _leaky_relu(mm(h, w3_ref, b3_ref))            # (TB, 128); lanes >= 32 are 0

    mu = h3[:, :LATENT_N]
    log_var = h3[:, LATENT_N:2 * LATENT_N]

    # Fused KLD (per-row) written into lane 32 of the 128-lane encoder slab.
    kld = 0.5 * jnp.sum(mu * mu - log_var + jnp.exp(log_var) - 1.0,
                        axis=1, keepdims=True)          # (TB, 1)
    lane = lax.broadcasted_iota(jnp.int32, (1, LAT_OUT), 1)
    enc_ref[...] = jnp.where(lane == 2 * LATENT_N, kld, h3)

    # ---------- reparameterization (shared noise, as in the PyTorch module) ----------
    z = mu + jnp.exp(0.5 * log_var) * eps_ref[...]

    # ---------- decoder ----------
    h = _leaky_relu(mm(z, w4_ref, b4_ref))
    h = _leaky_relu(mm(h, w5_ref, b5_ref))

    # Fused per-position heads: one (TB, 256) matmul; padded lanes are exactly 0.
    logits = mm(h, wo_ref, bo_ref)

    # Segment-matmul log_softmax:
    #   m >= every per-head max -> exp(logits - m) in (0, 1] (no overflow).
    #   per-head sums via one MXU matmul; per-head LSE broadcast back via another.
    m = jnp.max(logits, axis=1, keepdims=True)                       # (TB, 1)
    p = jnp.exp(logits - m)                                          # (TB, 256) EUP
    sums = jnp.dot(p, st_ref[...], preferred_element_type=f32)       # (TB, 16)
    lse = m + jnp.log(sums + pad1_ref[...])                          # padded heads: log(1)=0
    logp_ref[...] = logits - jnp.dot(lse, sb_ref[...],
                                     preferred_element_type=f32)     # (TB, 256)


# ------------------------------------------------------------------ params --
def init_params(key):
    """Deterministic synthetic parameters (nn.Linear shapes, stored (in, out))."""
    ks = jax.random.split(key, 12)

    def lin(kw, kb, fan_in, fan_out):
        bound = 1.0 / jnp.sqrt(jnp.float32(fan_in))
        w = jax.random.uniform(kw, (fan_in, fan_out), jnp.float32, -bound, bound)
        b = jax.random.uniform(kb, (1, fan_out), jnp.float32, -bound, bound)
        return w, b

    w1, b1 = lin(ks[0], ks[1], IN_FEATURES, HIDDEN)
    w2, b2 = lin(ks[2], ks[3], HIDDEN, HIDDEN)
    w3, b3 = lin(ks[4], ks[5], HIDDEN, LATENT_N * 2)
    w4, b4 = lin(ks[6], ks[7], LATENT_N, HIDDEN)
    w5, b5 = lin(ks[8], ks[9], HIDDEN, HIDDEN)

    bound_o = 1.0 / jnp.sqrt(jnp.float32(HIDDEN))
    wo = jax.random.uniform(ks[10], (MOTIF_LENGTH, HIDDEN, AA_NUMBER),
                            jnp.float32, -bound_o, bound_o)
    bo = jax.random.uniform(ks[11], (MOTIF_LENGTH, 1, AA_NUMBER),
                            jnp.float32, -bound_o, bound_o)
    return dict(w1=w1, b1=b1, w2=w2, b2=b2, w3=w3, b3=b3,
                w4=w4, b4=b4, w5=w5, b5=b5, wo=wo, bo=bo)


def prepare_params(params, weight_dtype=jnp.bfloat16):
    """Pad to lane-aligned shapes, fuse the 11 heads, cast weights to bf16,
    and build the f32 segment matrices used by the log_softmax epilogue."""
    def padw(w, rows, cols):
        return jnp.pad(w, ((0, rows - w.shape[0]), (0, cols - w.shape[1])))

    def padb(b, cols):
        return jnp.pad(b, ((0, 0), (0, cols - b.shape[1])))

    wo_cat = jnp.transpose(params["wo"], (1, 0, 2)).reshape(HIDDEN, OUT_FEATURES)
    bo_cat = params["bo"].reshape(1, OUT_FEATURES)

    p = dict(
        w1=padw(params["w1"], IN_PAD, HIDDEN_PAD),      b1=padb(params["b1"], HIDDEN_PAD),
        w2=padw(params["w2"], HIDDEN_PAD, HIDDEN_PAD),  b2=padb(params["b2"], HIDDEN_PAD),
        w3=padw(params["w3"], HIDDEN_PAD, LAT_OUT),     b3=padb(params["b3"], LAT_OUT),
        w4=padw(params["w4"], LATENT_N, HIDDEN_PAD),    b4=padb(params["b4"], HIDDEN_PAD),
        w5=padw(params["w5"], HIDDEN_PAD, HIDDEN_PAD),  b5=padb(params["b5"], HIDDEN_PAD),
        wo=padw(wo_cat, HIDDEN_PAD, OUT_PAD),           bo=padb(bo_cat, OUT_PAD),
    )
    for k in ("w1", "w2", "w3", "w4", "w5", "wo"):
        p[k] = p[k].astype(weight_dtype)

    # Segment matrices (kept f32 for accurate per-head sums / LSE broadcast).
    head_of_lane = jnp.arange(OUT_PAD) // AA_NUMBER               # (256,)
    valid_lane = jnp.arange(OUT_PAD) < OUT_FEATURES               # (256,)
    heads = jnp.arange(HEADS_PAD)                                 # (16,)
    sb = ((heads[:, None] == head_of_lane[None, :])
          & valid_lane[None, :]).astype(jnp.float32)              # (16, 256)
    p["sb"] = sb
    p["st"] = sb.T                                                # (256, 16)
    p["pad1"] = (heads[None, :] >= MOTIF_LENGTH).astype(jnp.float32)  # (1, 16)
    return p


# ----------------------------------------------------------------- forward --
def _round_up(n, m):
    return ((n + m - 1) // m) * m


@jax.jit
def _forward_core(x, prepared, eps):
    """Returns (mu, log_var, kld, logp) with logp shaped (M, B, AA)."""
    p = prepared
    B = x.shape[0]
    # bf16 + lane-pad the input in the wrapper: halves the x DMA, aligns K to 256.
    x2 = x.reshape(B, IN_FEATURES).astype(jnp.bfloat16)
    x2 = jnp.pad(x2, ((0, 0), (0, IN_PAD - IN_FEATURES)))

    # Batch tiling: big tiles amortize per-step overhead; if everything fits in a
    # single tile, split into >=2 so both TensorCores engage on v7x (costs only
    # one extra ~0.35us step on single-TC v5e/v6e).
    TB = min(TB_MAX, _round_up(B, 8))
    B_pad = _round_up(B, TB)
    if B_pad // TB == 1 and B_pad >= 16:
        TB = _round_up(B_pad // 2, 8)
        B_pad = _round_up(B, TB)
    if B_pad != B:
        x2 = jnp.pad(x2, ((0, B_pad - B), (0, 0)))
    grid = (B_pad // TB,)

    def batch_spec(ncols):
        return pl.BlockSpec((TB, ncols), lambda i: (i, 0))

    def const2d(arr):
        return pl.BlockSpec(arr.shape, lambda i: (0, 0))

    flops = 2 * B_pad * (IN_PAD * HIDDEN_PAD + HIDDEN_PAD * HIDDEN_PAD
                         + HIDDEN_PAD * LAT_OUT + LATENT_N * HIDDEN_PAD
                         + HIDDEN_PAD * HIDDEN_PAD + HIDDEN_PAD * OUT_PAD
                         + OUT_PAD * HEADS_PAD + HEADS_PAD * OUT_PAD)
    weight_bytes = sum(int(v.size) * v.dtype.itemsize for v in p.values())
    bytes_accessed = int(weight_bytes + x2.size * x2.dtype.itemsize
                         + B_pad * (OUT_PAD + LAT_OUT) * 4)
    cost = pl.CostEstimate(
        flops=int(flops),
        transcendentals=int(B_pad * (OUT_PAD + 3 * LATENT_N + HEADS_PAD)),
        bytes_accessed=bytes_accessed,
    )

    enc, logp = pl.pallas_call(
        _vae_kernel,
        grid=grid,
        in_specs=[
            batch_spec(IN_PAD),
            const2d(p["w1"]), const2d(p["b1"]),
            const2d(p["w2"]), const2d(p["b2"]),
            const2d(p["w3"]), const2d(p["b3"]),
            const2d(p["w4"]), const2d(p["b4"]),
            const2d(p["w5"]), const2d(p["b5"]),
            const2d(p["wo"]), const2d(p["bo"]),
            const2d(p["st"]), const2d(p["sb"]), const2d(p["pad1"]),
            const2d(eps),
        ],
        out_specs=(batch_spec(LAT_OUT), batch_spec(OUT_PAD)),
        out_shape=(
            jax.ShapeDtypeStruct((B_pad, LAT_OUT), jnp.float32),
            jax.ShapeDtypeStruct((B_pad, OUT_PAD), jnp.float32),
        ),
        compiler_params=pltpu.CompilerParams(
            dimension_semantics=("parallel",),
            vmem_limit_bytes=48 * 1024 * 1024,   # safe on v5e (16 MiB default scoped)
        ),                                       # and under v7x's 64 MiB physical
        cost_estimate=cost,
    )(
        x2,
        p["w1"], p["b1"], p["w2"], p["b2"], p["w3"], p["b3"],
        p["w4"], p["b4"], p["w5"], p["b5"], p["wo"], p["bo"],
        p["st"], p["sb"], p["pad1"],
        eps,
    )

    enc = enc[:B]
    mu = enc[:, :LATENT_N]
    log_var = enc[:, LATENT_N:2 * LATENT_N]
    kld = enc[:, 2 * LATENT_N]                       # fused in-kernel KLD
    logp = logp[:B, :OUT_FEATURES]
    logp = logp.reshape(B, MOTIF_LENGTH, AA_NUMBER).transpose(1, 0, 2)
    return mu, log_var, kld, logp


def vae_cdrh3_forward(x, prepared_params, eps):
    """x: (B, motif_length, aa_number) f32; eps: (1, latent_n) f32.

    Returns a dict matching the PyTorch module: 'mu', 'log_var', 'KLD' and
    integer keys 0..motif_length-1 with per-position log-probabilities.
    (Dict is built outside jit because it mixes str and int keys.)
    """
    mu, log_var, kld, logp = _forward_core(x, prepared_params, eps)
    output = {"mu": mu, "log_var": log_var, "KLD": kld}
    for i in range(MOTIF_LENGTH):
        output[i] = logp[i]
    return output


# -------------------------------------------------------------- reference --
def _reference_forward(x, prepared, eps):
    """Pure-JAX reference using the same prepared (padded, bf16) params."""
    p = prepared
    f32 = jnp.float32

    def mm(a, w, b):
        return jnp.dot(a.astype(w.dtype), w, preferred_element_type=f32) + b

    B = x.shape[0]
    x2 = x.reshape(B, IN_FEATURES).astype(jnp.bfloat16)
    x2 = jnp.pad(x2, ((0, 0), (0, IN_PAD - IN_FEATURES)))
    h = _leaky_relu(mm(x2, p["w1"], p["b1"]))
    h = _leaky_relu(mm(h, p["w2"], p["b2"]))
    h3 = _leaky_relu(mm(h, p["w3"], p["b3"]))
    mu, log_var = h3[:, :LATENT_N], h3[:, LATENT_N:2 * LATENT_N]
    kld = 0.5 * jnp.sum(mu * mu - log_var + jnp.exp(log_var) - 1.0, axis=1)
    z = mu + jnp.exp(0.5 * log_var) * eps
    h = _leaky_relu(mm(z, p["w4"], p["b4"]))
    h = _leaky_relu(mm(h, p["w5"], p["b5"]))
    logits = mm(h, p["wo"], p["bo"])[:, :OUT_FEATURES]
    logp = jax.nn.log_softmax(logits.reshape(B, MOTIF_LENGTH, AA_NUMBER), axis=-1)
    return mu, log_var, kld, logp.transpose(1, 0, 2)


if __name__ == "__main__":
    key = jax.random.PRNGKey(0)
    k_param, k_x, k_eps = jax.random.split(key, 3)

    B = 4
    params = init_params(k_param)
    prepared = prepare_params(params)

    # synthetic "one-hot-ish" input of shape (B, motif_length, aa_number)
    x = jax.random.uniform(k_x, (B, MOTIF_LENGTH, AA_NUMBER), jnp.float32)
    # torch.randn(latent_n): one noise vector shared across the batch (as in the spec)
    eps = jax.random.normal(k_eps, (1, LATENT_N), jnp.float32)

    out = vae_cdrh3_forward(x, prepared, eps)
    jax.block_until_ready(list(out.values()))   # dict has mixed keys -> block on values

    # shape sanity
    assert out["mu"].shape == (B, LATENT_N)
    assert out["log_var"].shape == (B, LATENT_N)
    assert out["KLD"].shape == (B,)
    for i in range(MOTIF_LENGTH):
        assert out[i].shape == (B, AA_NUMBER)
        s = jnp.sum(jnp.exp(out[i]), axis=1)
        assert bool(jnp.all(jnp.abs(s - 1.0) < 1e-4))

    # numerical check vs pure-JAX reference (same prepared params)
    ref_mu, ref_lv, ref_kld, ref_logp = _reference_forward(x, prepared, eps)
    assert bool(jnp.max(jnp.abs(out["mu"] - ref_mu)) < 1e-2)
    assert bool(jnp.max(jnp.abs(out["log_var"] - ref_lv)) < 1e-2)
    assert bool(jnp.max(jnp.abs(out["KLD"] - ref_kld)) < 1e-2)
    for i in range(MOTIF_LENGTH):
        assert bool(jnp.max(jnp.abs(out[i] - ref_logp[i])) < 1e-2)

    print("KERNEL_OK")
</pallas_src>

<mosaic_0001>
module attributes {stable_mosaic.version = 11 : i64} {
  func.func @_vae_kernel(%arg0: i32, %arg1: memref<8x256xbf16, #tpu.memory_space<vmem>>, %arg2: memref<256x512xbf16, #tpu.memory_space<vmem>>, %arg3: memref<1x512xf32, #tpu.memory_space<vmem>>, %arg4: memref<512x512xbf16, #tpu.memory_space<vmem>>, %arg5: memref<1x512xf32, #tpu.memory_space<vmem>>, %arg6: memref<512x128xbf16, #tpu.memory_space<vmem>>, %arg7: memref<1x128xf32, #tpu.memory_space<vmem>>, %arg8: memref<16x512xbf16, #tpu.memory_space<vmem>>, %arg9: memref<1x512xf32, #tpu.memory_space<vmem>>, %arg10: memref<512x512xbf16, #tpu.memory_space<vmem>>, %arg11: memref<1x512xf32, #tpu.memory_space<vmem>>, %arg12: memref<512x256xbf16, #tpu.memory_space<vmem>>, %arg13: memref<1x256xf32, #tpu.memory_space<vmem>>, %arg14: memref<256x16xf32, #tpu.memory_space<vmem>>, %arg15: memref<16x256xf32, #tpu.memory_space<vmem>>, %arg16: memref<1x16xf32, #tpu.memory_space<vmem>>, %arg17: memref<1x16xf32, #tpu.memory_space<vmem>>, %arg18: memref<8x128xf32, #tpu.memory_space<vmem>>, %arg19: memref<8x256xf32, #tpu.memory_space<vmem>>) attributes {dimension_semantics = [#tpu.dimension_semantics<parallel>], iteration_bounds = array<i64: 1>, scalar_prefetch = 0 : i64, scratch_operands = 0 : i64, tpu.core_type = #tpu.core_type<tc>, window_params = [{transform_indices = @transform_0, window_bounds = array<i64: 8, 256>}, {pipeline_mode = #tpu.pipeline_mode<synchronous>, transform_indices = @transform_1, window_bounds = array<i64: 256, 512>}, {pipeline_mode = #tpu.pipeline_mode<synchronous>, transform_indices = @transform_2, window_bounds = array<i64: 1, 512>}, {pipeline_mode = #tpu.pipeline_mode<synchronous>, transform_indices = @transform_3, window_bounds = array<i64: 512, 512>}, {pipeline_mode = #tpu.pipeline_mode<synchronous>, transform_indices = @transform_4, window_bounds = array<i64: 1, 512>}, {pipeline_mode = #tpu.pipeline_mode<synchronous>, transform_indices = @transform_5, window_bounds = array<i64: 512, 128>}, {pipeline_mode = #tpu.pipeline_mode<synchronous>, transform_indices = @transform_6, window_bounds = array<i64: 1, 128>}, {pipeline_mode = #tpu.pipeline_mode<synchronous>, transform_indices = @transform_7, window_bounds = array<i64: 16, 512>}, {pipeline_mode = #tpu.pipeline_mode<synchronous>, transform_indices = @transform_8, window_bounds = array<i64: 1, 512>}, {pipeline_mode = #tpu.pipeline_mode<synchronous>, transform_indices = @transform_9, window_bounds = array<i64: 512, 512>}, {pipeline_mode = #tpu.pipeline_mode<synchronous>, transform_indices = @transform_10, window_bounds = array<i64: 1, 512>}, {pipeline_mode = #tpu.pipeline_mode<synchronous>, transform_indices = @transform_11, window_bounds = array<i64: 512, 256>}, {pipeline_mode = #tpu.pipeline_mode<synchronous>, transform_indices = @transform_12, window_bounds = array<i64: 1, 256>}, {pipeline_mode = #tpu.pipeline_mode<synchronous>, transform_indices = @transform_13, window_bounds = array<i64: 256, 16>}, {pipeline_mode = #tpu.pipeline_mode<synchronous>, transform_indices = @transform_14, window_bounds = array<i64: 16, 256>}, {pipeline_mode = #tpu.pipeline_mode<synchronous>, transform_indices = @transform_15, window_bounds = array<i64: 1, 16>}, {pipeline_mode = #tpu.pipeline_mode<synchronous>, transform_indices = @transform_16, window_bounds = array<i64: 1, 16>}, {transform_indices = @transform_17, window_bounds = array<i64: 8, 128>}, {transform_indices = @transform_18, window_bounds = array<i64: 8, 256>}]} {
    %c0 = arith.constant 0 : index
    %c0_0 = arith.constant 0 : index
    %0 = vector.load %arg1[%c0, %c0_0] : memref<8x256xbf16, #tpu.memory_space<vmem>>, vector<8x256xbf16>
    %c0_1 = arith.constant 0 : index
    %c0_2 = arith.constant 0 : index
    %1 = vector.load %arg2[%c0_1, %c0_2] : memref<256x512xbf16, #tpu.memory_space<vmem>>, vector<256x512xbf16>
    %cst = arith.constant dense<0.000000e+00> : vector<8x512xf32>
    %2 = tpu.matmul %0, %1, %cst {dimension_numbers = #tpu.dot_dimension_numbers<[1], [0], [0], [1], [0, 0, 1, 1], [], []>} : vector<8x256xbf16>, vector<256x512xbf16>, vector<8x512xf32> -> vector<8x512xf32>
    %c0_3 = arith.constant 0 : index
    %c0_4 = arith.constant 0 : index
    %3 = vector.load %arg3[%c0_3, %c0_4] : memref<1x512xf32, #tpu.memory_space<vmem>>, vector<1x512xf32>
    %4 = vector.broadcast %3 : vector<1x512xf32> to vector<8x512xf32>
    %5 = arith.addf %2, %4 : vector<8x512xf32>
    %cst_5 = arith.constant 0.000000e+00 : f32
    %6 = vector.broadcast %cst_5 : f32 to vector<8x512xf32>
    %7 = arith.cmpf ogt, %5, %6 : vector<8x512xf32>
    %cst_6 = arith.constant 0.00999999977 : f32
    %8 = vector.broadcast %cst_6 : f32 to vector<8x512xf32>
    %9 = arith.mulf %8, %5 : vector<8x512xf32>
    %10 = arith.select %7, %5, %9 : vector<8x512xi1>, vector<8x512xf32>
    %11 = arith.truncf %10 : vector<8x512xf32> to vector<8x512xbf16>
    %c0_7 = arith.constant 0 : index
    %c0_8 = arith.constant 0 : index
    %12 = vector.load %arg4[%c0_7, %c0_8] : memref<512x512xbf16, #tpu.memory_space<vmem>>, vector<512x512xbf16>
    %cst_9 = arith.constant dense<0.000000e+00> : vector<8x512xf32>
    %13 = tpu.matmul %11, %12, %cst_9 {dimension_numbers = #tpu.dot_dimension_numbers<[1], [0], [0], [1], [0, 0, 1, 1], [], []>} : vector<8x512xbf16>, vector<512x512xbf16>, vector<8x512xf32> -> vector<8x512xf32>
    %c0_10 = arith.constant 0 : index
    %c0_11 = arith.constant 0 : index
    %14 = vector.load %arg5[%c0_10, %c0_11] : memref<1x512xf32, #tpu.memory_space<vmem>>, vector<1x512xf32>
    %15 = vector.broadcast %14 : vector<1x512xf32> to vector<8x512xf32>
    %16 = arith.addf %13, %15 : vector<8x512xf32>
    %cst_12 = arith.constant 0.000000e+00 : f32
    %17 = vector.broadcast %cst_12 : f32 to vector<8x512xf32>
    %18 = arith.cmpf ogt, %16, %17 : vector<8x512xf32>
    %cst_13 = arith.constant 0.00999999977 : f32
    %19 = vector.broadcast %cst_13 : f32 to vector<8x512xf32>
    %20 = arith.mulf %19, %16 : vector<8x512xf32>
    %21 = arith.select %18, %16, %20 : vector<8x512xi1>, vector<8x512xf32>
    %22 = arith.truncf %21 : vector<8x512xf32> to vector<8x512xbf16>
    %c0_14 = arith.constant 0 : index
    %c0_15 = arith.constant 0 : index
    %23 = vector.load %arg6[%c0_14, %c0_15] : memref<512x128xbf16, #tpu.memory_space<vmem>>, vector<512x128xbf16>
    %cst_16 = arith.constant dense<0.000000e+00> : vector<8x128xf32>
    %24 = tpu.matmul %22, %23, %cst_16 {dimension_numbers = #tpu.dot_dimension_numbers<[1], [0], [0], [1], [0, 0, 1, 1], [], []>} : vector<8x512xbf16>, vector<512x128xbf16>, vector<8x128xf32> -> vector<8x128xf32>
    %c0_17 = arith.constant 0 : index
    %c0_18 = arith.constant 0 : index
    %25 = vector.load %arg7[%c0_17, %c0_18] : memref<1x128xf32, #tpu.memory_space<vmem>>, vector<1x128xf32>
    %26 = vector.broadcast %25 : vector<1x128xf32> to vector<8x128xf32>
    %27 = arith.addf %24, %26 : vector<8x128xf32>
    %cst_19 = arith.constant 0.000000e+00 : f32
    %28 = vector.broadcast %cst_19 : f32 to vector<8x128xf32>
    %29 = arith.cmpf ogt, %27, %28 : vector<8x128xf32>
    %cst_20 = arith.constant 0.00999999977 : f32
    %30 = vector.broadcast %cst_20 : f32 to vector<8x128xf32>
    %31 = arith.mulf %30, %27 : vector<8x128xf32>
    %32 = arith.select %29, %27, %31 : vector<8x128xi1>, vector<8x128xf32>
    %33 = vector.extract_strided_slice %32 {offsets = [0, 0], sizes = [8, 16], strides = [1, 1]} : vector<8x128xf32> to vector<8x16xf32>
    %34 = vector.extract_strided_slice %32 {offsets = [0, 16], sizes = [8, 16], strides = [1, 1]} : vector<8x128xf32> to vector<8x16xf32>
    %35 = arith.mulf %33, %33 : vector<8x16xf32>
    %36 = arith.subf %35, %34 : vector<8x16xf32>
    %37 = math.exp %34 : vector<8x16xf32>
    %38 = arith.addf %36, %37 : vector<8x16xf32>
    %cst_21 = arith.constant 1.000000e+00 : f32
    %39 = vector.broadcast %cst_21 : f32 to vector<8x16xf32>
    %40 = arith.subf %38, %39 : vector<8x16xf32>
    %cst_22 = arith.constant dense<0.000000e+00> : vector<8xf32>
    %41 = vector.multi_reduction <add>, %40, %cst_22 [1] : vector<8x16xf32> to vector<8xf32>
    %42 = vector.shape_cast %41 : vector<8xf32> to vector<8x1xf32>
    %cst_23 = arith.constant 5.000000e-01 : f32
    %43 = vector.broadcast %cst_23 : f32 to vector<8x1xf32>
    %44 = arith.mulf %43, %42 : vector<8x1xf32>
    %45 = tpu.iota {dimensions = array<i32: 1>} : vector<1x128xi32>
    %c32_i32 = arith.constant 32 : i32
    %46 = vector.broadcast %c32_i32 : i32 to vector<1x128xi32>
    %47 = arith.cmpi eq, %45, %46 : vector<1x128xi32>
    %48 = vector.shape_cast %47 : vector<1x128xi1> to vector<1x128xi1>
    %49 = vector.broadcast %48 : vector<1x128xi1> to vector<8x128xi1>
    %50 = vector.shape_cast %44 : vector<8x1xf32> to vector<8x1xf32>
    %51 = vector.broadcast %50 : vector<8x1xf32> to vector<8x128xf32>
    %52 = arith.select %49, %51, %32 : vector<8x128xi1>, vector<8x128xf32>
    %c0_24 = arith.constant 0 : index
    %c0_25 = arith.constant 0 : index
    %53 = vector.load %arg18[%c0_24, %c0_25] : memref<8x128xf32, #tpu.memory_space<vmem>>, vector<8x128xf32>
    tpu.vector_store %arg18[%c0_24, %c0_25], %52 {strides = array<i32>} : memref<8x128xf32, #tpu.memory_space<vmem>>, vector<8x128xf32>,
    %cst_26 = arith.constant 5.000000e-01 : f32
    %54 = vector.broadcast %cst_26 : f32 to vector<8x16xf32>
    %55 = arith.mulf %54, %34 : vector<8x16xf32>
    %56 = math.exp %55 : vector<8x16xf32>
    %c0_27 = arith.constant 0 : index
    %c0_28 = arith.constant 0 : index
    %57 = vector.load %arg17[%c0_27, %c0_28] : memref<1x16xf32, #tpu.memory_space<vmem>>, vector<1x16xf32>
    %58 = vector.broadcast %57 : vector<1x16xf32> to vector<8x16xf32>
    %59 = arith.mulf %56, %58 : vector<8x16xf32>
    %60 = arith.addf %33, %59 : vector<8x16xf32>
    %61 = arith.truncf %60 : vector<8x16xf32> to vector<8x16xbf16>
    %c0_29 = arith.constant 0 : index
    %c0_30 = arith.constant 0 : index
    %62 = vector.load %arg8[%c0_29, %c0_30] : memref<16x512xbf16, #tpu.memory_space<vmem>>, vector<16x512xbf16>
    %cst_31 = arith.constant dense<0.000000e+00> : vector<8x512xf32>
    %63 = tpu.matmul %61, %62, %cst_31 {dimension_numbers = #tpu.dot_dimension_numbers<[1], [0], [0], [1], [0, 0, 1, 1], [], []>} : vector<8x16xbf16>, vector<16x512xbf16>, vector<8x512xf32> -> vector<8x512xf32>
    %c0_32 = arith.constant 0 : index
    %c0_33 = arith.constant 0 : index
    %64 = vector.load %arg9[%c0_32, %c0_33] : memref<1x512xf32, #tpu.memory_space<vmem>>, vector<1x512xf32>
    %65 = vector.broadcast %64 : vector<1x512xf32> to vector<8x512xf32>
    %66 = arith.addf %63, %65 : vector<8x512xf32>
    %cst_34 = arith.constant 0.000000e+00 : f32
    %67 = vector.broadcast %cst_34 : f32 to vector<8x512xf32>
    %68 = arith.cmpf ogt, %66, %67 : vector<8x512xf32>
    %cst_35 = arith.constant 0.00999999977 : f32
    %69 = vector.broadcast %cst_35 : f32 to vector<8x512xf32>
    %70 = arith.mulf %69, %66 : vector<8x512xf32>
    %71 = arith.select %68, %66, %70 : vector<8x512xi1>, vector<8x512xf32>
    %72 = arith.truncf %71 : vector<8x512xf32> to vector<8x512xbf16>
    %c0_36 = arith.constant 0 : index
    %c0_37 = arith.constant 0 : index
    %73 = vector.load %arg10[%c0_36, %c0_37] : memref<512x512xbf16, #tpu.memory_space<vmem>>, vector<512x512xbf16>
    %cst_38 = arith.constant dense<0.000000e+00> : vector<8x512xf32>
    %74 = tpu.matmul %72, %73, %cst_38 {dimension_numbers = #tpu.dot_dimension_numbers<[1], [0], [0], [1], [0, 0, 1, 1], [], []>} : vector<8x512xbf16>, vector<512x512xbf16>, vector<8x512xf32> -> vector<8x512xf32>
    %c0_39 = arith.constant 0 : index
    %c0_40 = arith.constant 0 : index
    %75 = vector.load %arg11[%c0_39, %c0_40] : memref<1x512xf32, #tpu.memory_space<vmem>>, vector<1x512xf32>
    %76 = vector.broadcast %75 : vector<1x512xf32> to vector<8x512xf32>
    %77 = arith.addf %74, %76 : vector<8x512xf32>
    %cst_41 = arith.constant 0.000000e+00 : f32
    %78 = vector.broadcast %cst_41 : f32 to vector<8x512xf32>
    %79 = arith.cmpf ogt, %77, %78 : vector<8x512xf32>
    %cst_42 = arith.constant 0.00999999977 : f32
    %80 = vector.broadcast %cst_42 : f32 to vector<8x512xf32>
    %81 = arith.mulf %80, %77 : vector<8x512xf32>
    %82 = arith.select %79, %77, %81 : vector<8x512xi1>, vector<8x512xf32>
    %83 = arith.truncf %82 : vector<8x512xf32> to vector<8x512xbf16>
    %c0_43 = arith.constant 0 : index
    %c0_44 = arith.constant 0 : index
    %84 = vector.load %arg12[%c0_43, %c0_44] : memref<512x256xbf16, #tpu.memory_space<vmem>>, vector<512x256xbf16>
    %cst_45 = arith.constant dense<0.000000e+00> : vector<8x256xf32>
    %85 = tpu.matmul %83, %84, %cst_45 {dimension_numbers = #tpu.dot_dimension_numbers<[1], [0], [0], [1], [0, 0, 1, 1], [], []>} : vector<8x512xbf16>, vector<512x256xbf16>, vector<8x256xf32> -> vector<8x256xf32>
    %c0_46 = arith.constant 0 : index
    %c0_47 = arith.constant 0 : index
    %86 = vector.load %arg13[%c0_46, %c0_47] : memref<1x256xf32, #tpu.memory_space<vmem>>, vector<1x256xf32>
    %87 = vector.broadcast %86 : vector<1x256xf32> to vector<8x256xf32>
    %88 = arith.addf %85, %87 : vector<8x256xf32>
    %cst_48 = arith.constant dense<0xFF800000> : vector<8xf32>
    %89 = vector.multi_reduction <maximumf>, %88, %cst_48 [1] : vector<8x256xf32> to vector<8xf32>
    %90 = vector.shape_cast %89 : vector<8xf32> to vector<8x1xf32>
    %91 = vector.broadcast %90 : vector<8x1xf32> to vector<8x256xf32>
    %92 = arith.subf %88, %91 : vector<8x256xf32>
    %93 = math.exp %92 : vector<8x256xf32>
    %c0_49 = arith.constant 0 : index
    %c0_50 = arith.constant 0 : index
    %94 = vector.load %arg14[%c0_49, %c0_50] : memref<256x16xf32, #tpu.memory_space<vmem>>, vector<256x16xf32>
    %cst_51 = arith.constant dense<0.000000e+00> : vector<8x16xf32>
    %95 = tpu.matmul %93, %94, %cst_51 {dimension_numbers = #tpu.dot_dimension_numbers<[1], [0], [0], [1], [0, 0, 1, 1], [], []>} : vector<8x256xf32>, vector<256x16xf32>, vector<8x16xf32> -> vector<8x16xf32>
    %c0_52 = arith.constant 0 : index
    %c0_53 = arith.constant 0 : index
    %96 = vector.load %arg16[%c0_52, %c0_53] : memref<1x16xf32, #tpu.memory_space<vmem>>, vector<1x16xf32>
    %97 = vector.broadcast %96 : vector<1x16xf32> to vector<8x16xf32>
    %98 = arith.addf %95, %97 : vector<8x16xf32>
    %99 = math.log %98 : vector<8x16xf32>
    %100 = vector.broadcast %90 : vector<8x1xf32> to vector<8x16xf32>
    %101 = arith.addf %100, %99 : vector<8x16xf32>
    %c0_54 = arith.constant 0 : index
    %c0_55 = arith.constant 0 : index
    %102 = vector.load %arg15[%c0_54, %c0_55] : memref<16x256xf32, #tpu.memory_space<vmem>>, vector<16x256xf32>
    %cst_56 = arith.constant dense<0.000000e+00> : vector<8x256xf32>
    %103 = tpu.matmul %101, %102, %cst_56 {dimension_numbers = #tpu.dot_dimension_numbers<[1], [0], [0], [1], [0, 0, 1, 1], [], []>} : vector<8x16xf32>, vector<16x256xf32>, vector<8x256xf32> -> vector<8x256xf32>
    %104 = arith.subf %88, %103 : vector<8x256xf32>
    %c0_57 = arith.constant 0 : index
    %c0_58 = arith.constant 0 : index
    %105 = vector.load %arg19[%c0_57, %c0_58] : memref<8x256xf32, #tpu.memory_space<vmem>>, vector<8x256xf32>
    tpu.vector_store %arg19[%c0_57, %c0_58], %104 {strides = array<i32>} : memref<8x256xf32, #tpu.memory_space<vmem>>, vector<8x256xf32>,
    return
  }
  func.func @transform_0(%arg0: i32) -> (i32, i32) {
    %c0_i32 = arith.constant 0 : i32
    %c0_i32_0 = arith.constant 0 : i32
    return %arg0, %c0_i32 : i32, i32
  }
  func.func @transform_1(%arg0: i32) -> (i32, i32) {
    %c0_i32 = arith.constant 0 : i32
    %c0_i32_0 = arith.constant 0 : i32
    %c0_i32_1 = arith.constant 0 : i32
    return %c0_i32, %c0_i32_0 : i32, i32
  }
  func.func @transform_2(%arg0: i32) -> (i32, i32) {
    %c0_i32 = arith.constant 0 : i32
    %c0_i32_0 = arith.constant 0 : i32
    %c0_i32_1 = arith.constant 0 : i32
    return %c0_i32, %c0_i32_0 : i32, i32
  }
  func.func @transform_3(%arg0: i32) -> (i32, i32) {
    %c0_i32 = arith.constant 0 : i32
    %c0_i32_0 = arith.constant 0 : i32
    %c0_i32_1 = arith.constant 0 : i32
    return %c0_i32, %c0_i32_0 : i32, i32
  }
  func.func @transform_4(%arg0: i32) -> (i32, i32) {
    %c0_i32 = arith.constant 0 : i32
    %c0_i32_0 = arith.constant 0 : i32
    %c0_i32_1 = arith.constant 0 : i32
    return %c0_i32, %c0_i32_0 : i32, i32
  }
  func.func @transform_5(%arg0: i32) -> (i32, i32) {
    %c0_i32 = arith.constant 0 : i32
    %c0_i32_0 = arith.constant 0 : i32
    %c0_i32_1 = arith.constant 0 : i32
    return %c0_i32, %c0_i32_0 : i32, i32
  }
  func.func @transform_6(%arg0: i32) -> (i32, i32) {
    %c0_i32 = arith.constant 0 : i32
    %c0_i32_0 = arith.constant 0 : i32
    %c0_i32_1 = arith.constant 0 : i32
    return %c0_i32, %c0_i32_0 : i32, i32
  }
  func.func @transform_7(%arg0: i32) -> (i32, i32) {
    %c0_i32 = arith.constant 0 : i32
    %c0_i32_0 = arith.constant 0 : i32
    %c0_i32_1 = arith.constant 0 : i32
    return %c0_i32, %c0_i32_0 : i32, i32
  }
  func.func @transform_8(%arg0: i32) -> (i32, i32) {
    %c0_i32 = arith.constant 0 : i32
    %c0_i32_0 = arith.constant 0 : i32
    %c0_i32_1 = arith.constant 0 : i32
    return %c0_i32, %c0_i32_0 : i32, i32
  }
  func.func @transform_9(%arg0: i32) -> (i32, i32) {
    %c0_i32 = arith.constant 0 : i32
    %c0_i32_0 = arith.constant 0 : i32
    %c0_i32_1 = arith.constant 0 : i32
    return %c0_i32, %c0_i32_0 : i32, i32
  }
  func.func @transform_10(%arg0: i32) -> (i32, i32) {
    %c0_i32 = arith.constant 0 : i32
    %c0_i32_0 = arith.constant 0 : i32
    %c0_i32_1 = arith.constant 0 : i32
    return %c0_i32, %c0_i32_0 : i32, i32
  }
  func.func @transform_11(%arg0: i32) -> (i32, i32) {
    %c0_i32 = arith.constant 0 : i32
    %c0_i32_0 = arith.constant 0 : i32
    %c0_i32_1 = arith.constant 0 : i32
    return %c0_i32, %c0_i32_0 : i32, i32
  }
  func.func @transform_12(%arg0: i32) -> (i32, i32) {
    %c0_i32 = arith.constant 0 : i32
    %c0_i32_0 = arith.constant 0 : i32
    %c0_i32_1 = arith.constant 0 : i32
    return %c0_i32, %c0_i32_0 : i32, i32
  }
  func.func @transform_13(%arg0: i32) -> (i32, i32) {
    %c0_i32 = arith.constant 0 : i32
    %c0_i32_0 = arith.constant 0 : i32
    %c0_i32_1 = arith.constant 0 : i32
    return %c0_i32, %c0_i32_0 : i32, i32
  }
  func.func @transform_14(%arg0: i32) -> (i32, i32) {
    %c0_i32 = arith.constant 0 : i32
    %c0_i32_0 = arith.constant 0 : i32
    %c0_i32_1 = arith.constant 0 : i32
    return %c0_i32, %c0_i32_0 : i32, i32
  }
  func.func @transform_15(%arg0: i32) -> (i32, i32) {
    %c0_i32 = arith.constant 0 : i32
    %c0_i32_0 = arith.constant 0 : i32
    %c0_i32_1 = arith.constant 0 : i32
    return %c0_i32, %c0_i32_0 : i32, i32
  }
  func.func @transform_16(%arg0: i32) -> (i32, i32) {
    %c0_i32 = arith.constant 0 : i32
    %c0_i32_0 = arith.constant 0 : i32
    %c0_i32_1 = arith.constant 0 : i32
    return %c0_i32, %c0_i32_0 : i32, i32
  }
  func.func @transform_17(%arg0: i32) -> (i32, i32) {
    %c0_i32 = arith.constant 0 : i32
    %c0_i32_0 = arith.constant 0 : i32
    return %arg0, %c0_i32 : i32, i32
  }
  func.func @transform_18(%arg0: i32) -> (i32, i32) {
    %c0_i32 = arith.constant 0 : i32
    %c0_i32_0 = arith.constant 0 : i32
    return %arg0, %c0_i32 : i32, i32
  }
}

</mosaic_0001>

<bundles_post_ra>
// kernel: _forward_core.1
= control target key start
LH: loop header
LB: loop body
LE: loop exit
PB: predicated region body
PF: predicated region fallthrough
CT: control target
= control target key end

     0   :  { %s5473_s0 = inlined_call_operand.vmem [shape: bf16[8,256], index: 0, kind: input, shape index: {}]   ;;  %s5474_s1 = inlined_call_operand.hbm [shape: bf16[256,512], index: 1, kind: input, shape index: {}]   ;;  %s5475_s2 = inlined_call_operand.vmem [shape: f32[1,512], index: 2, kind: input, shape index: {}]   ;;  %s5476_s3 = inlined_call_operand.hbm [shape: bf16[512,512], index: 3, kind: input, shape index: {}]   ;;  %s5477_s4 = inlined_call_operand.vmem [shape: f32[1,512], index: 4, kind: input, shape index: {}]   ;;  %s5478_s5 = inlined_call_operand.vmem [shape: bf16[512,128], index: 5, kind: input, shape index: {}]   ;;  %s5479_s6 = inlined_call_operand.vmem [shape: f32[1,128], index: 6, kind: input, shape index: {}]   ;;  %s5480_s7 = inlined_call_operand.vmem [shape: bf16[16,512], index: 7, kind: input, shape index: {}]   ;;  %s5481_s8 = inlined_call_operand.vmem [shape: f32[1,512], index: 8, kind: input, shape index: {}]   ;;  %s5482_s9 = inlined_call_operand.hbm [shape: bf16[512,512], index: 9, kind: input, shape index: {}]   ;;  %s5483_s10 = inlined_call_operand.vmem [shape: f32[1,512], index: 10, kind: input, shape index: {}]   ;;  %s5484_s11 = inlined_call_operand.hbm [shape: bf16[512,256], index: 11, kind: input, shape index: {}]   ;;  %s5485_s12 = inlined_call_operand.vmem [shape: f32[1,256], index: 12, kind: input, shape index: {}]   ;;  %s5486_s13 = inlined_call_operand.vmem [shape: f32[256,16], index: 13, kind: input, shape index: {}]   ;;  %s5487_s14 = inlined_call_operand.vmem [shape: f32[16,256], index: 14, kind: input, shape index: {}]   ;;  %s5488_s15 = inlined_call_operand.vmem [shape: f32[1,16], index: 15, kind: input, shape index: {}]   ;;  %s5489_s16 = inlined_call_operand.vmem [shape: f32[1,16], index: 16, kind: input, shape index: {}]   ;;  %s5490_s17 = inlined_call_operand.vmem [shape: f32[8,128], index: 17, kind: output, shape index: {0}]   ;;  %s5491_s18 = inlined_call_operand.vmem [shape: f32[8,256], index: 18, kind: output, shape index: {1}]  }
   0x1   :  { %5492 = sst [smem:[#allocation12_spill]] %s5473_s0 }
   0x2   :  { %5493 = sst [smem:[#allocation13_spill]] %s5474_s1 }
   0x3   :  { %5494 = sst [smem:[#allocation14_spill]] %s5475_s2 }
   0x4   :  { %24 = vsyncpa [#allocation3], 0 }
   0x5   :  { %25 = vsyncpa [#allocation5], 0 }
   0x6   :  { %26 = vsyncpa [#allocation8], 0  ;;  %s5027_s27 = smov [#allocation4]   ;;  %s5028_s29 = smov [#allocation2]  }
   0x7   :  { %s48_s28 = sshll.u32 %s5027_s27, 4  ;;  %s34_s30 = sshll.u32 %s5028_s29, 4  ;;  %s49_s28 = int_to_ptr.vmem [resolvable:$true] %s48_s28  ;;  %s35_s30 = int_to_ptr.vmem [resolvable:$true] %s34_s30 }
   0x8   :  { %s4949_s0 = scalar_lea.vmem %s49_s28, 16384  ;;  %p4954_p1 = scmp.lt.s32.totalorder %s49_s28, %s49_s28 }
   0x9   :  { %p4950_p0 = scmp.ne.s32.totalorder %s49_s28, %s4949_s0  ;;  %p4955_p2 = scmp.lt.s32.totalorder %s4949_s0, %s4949_s0 }
   0xb   :  { %p4956_p3 = por %p4955_p2, %p4954_p1 }
   0xd   :  { %p4957_p4 = pnand %p4956_p3, %p4950_p0 }
   0xf   :  { %4960 = shalt.err (!%p4957_p4)
}
  0x10   :  { %s5029_s19 = smov 256   ;;  %s5030_s1 = smov 16  }
  0x11   :  { %54 = dma.hbm_to_vmem [thread:$0]  %s5476_s3, 16384, %s49_s28, [#allocation5], %s5029_s19, %s5029_s19, %s5030_s1  }
  0x12   :  { %s4969_s22 = scalar_lea.vmem %s35_s30, 8192  ;;  %p4974_p6 = scmp.lt.s32.totalorder %s35_s30, %s35_s30 }
  0x13   :  { %p4970_p5 = scmp.ne.s32.totalorder %s35_s30, %s4969_s22  ;;  %p4975_p7 = scmp.lt.s32.totalorder %s4969_s22, %s4969_s22 }
  0x15   :  { %p4976_p8 = por %p4975_p7, %p4974_p6 }
  0x17   :  { %p4977_p9 = pnand %p4976_p8, %p4970_p5 }
  0x19   :  { %4980 = shalt.err (!%p4977_p9)
}
  0x1a   :  { %s5495_s24 = sld [smem:[#allocation13_spill]]  ;;  %s5031_s25 = smov [#allocation6]  }
  0x1b   :  { %s70_s26 = sshll.u32 %s5031_s25, 4  ;;  %s5032_s27 = smov [#allocation7]   ;;  %s71_s26 = int_to_ptr.vmem [resolvable:$true] %s70_s26 }
  0x1c   :  { %s84_s29 = sshll.u32 %s5032_s27, 4  ;;  %s4989_s0 = scalar_lea.vmem %s71_s26, 16384  ;;  %s85_s29 = int_to_ptr.vmem [resolvable:$true] %s84_s29 }
  0x1d   :  { %p4990_p10 = scmp.ne.s32.totalorder %s71_s26, %s4989_s0  ;;  %p4994_p11 = scmp.lt.s32.totalorder %s71_s26, %s71_s26 }
  0x1e   :  { %p4995_p12 = scmp.lt.s32.totalorder %s4989_s0, %s4989_s0 }
  0x20   :  { %40 = dma.hbm_to_vmem [thread:$0]  %s5495_s24, 8192, %s35_s30, [#allocation3], %s5029_s19, %s5029_s19, %s5030_s1  }
  0x21   :  { %p4996_p13 = por %p4995_p12, %p4994_p11 }
  0x23   :  { %p4997_p0 = pnand %p4996_p13, %p4990_p10 }
  0x25   :  { %5000 = shalt.err (!%p4997_p0)
}
  0x26   :  { %76 = dma.hbm_to_vmem [thread:$0]  %s5482_s9, 16384, %s71_s26, [#allocation5], %s5029_s19, %s5029_s19, %s5030_s1  }
  0x27   :  { %s5009_s20 = scalar_lea.vmem %s85_s29, 8192  ;;  %p5014_p2 = scmp.lt.s32.totalorder %s85_s29, %s85_s29 }
  0x28   :  { %p5010_p1 = scmp.ne.s32.totalorder %s85_s29, %s5009_s20  ;;  %p5015_p3 = scmp.lt.s32.totalorder %s5009_s20, %s5009_s20 }
  0x2a   :  { %p5016_p4 = por %p5015_p3, %p5014_p2 }
  0x2c   :  { %p5017_p5 = pnand %p5016_p4, %p5010_p1 }
  0x2e   :  { %5020 = shalt.err (!%p5017_p5)
}
  0x2f   :  { %s5033_s30 = smov 128   ;;  %s5034_s21 = smov 8  }
  0x30   :  { %90 = dma.hbm_to_vmem [thread:$0]  %s5484_s11, 8192, %s85_s29, [#allocation8], %s5033_s30, %s5033_s30, %s5034_s21  }
  0x31   :  { %5021 = dma.done.wait [#allocation3], 8192  }
  0x32   :  { %5022 = vsyncadd [#allocation3], 4294959104 }
  0x33   :  { %5023 = dma.done.wait [#allocation5], 32768  }
  0x34   :  { %5024 = vsyncadd [#allocation5], 4294934528 }
  0x35   :  { %5025 = dma.done.wait [#allocation8], 8192  }
  0x36   :  { %5026 = vsyncadd [#allocation8], 4294959104  ;;  %v4315_v0 = vld [vmem:[#allocation2 + $0xe4] ss:$16 sps:$4 sm:$0xff]   ;;  %v4317_v1 = vld [vmem:[#allocation2 + $0xec] ss:$16 sps:$4 sm:$0xff]  }
  0x37   :  { %528 = vmatprep.subr.bf16.mxu0 %v4315_v0  ;;  %v4319_v2 = vld [vmem:[#allocation2 + $0xe0] ss:$16 sps:$4 sm:$0xff]   ;;  %v4320_v3 = vld [vmem:[#allocation2 + $0xe8] ss:$16 sps:$4 sm:$0xff]   ;;  %569 = vmatprep.subr.bf16.mxu1 %v4317_v1  ;;  %v4321_v4 = vld [vmem:[#allocation2 + $0xc4] ss:$16 sps:$4 sm:$0xff]  }
  0x38   :  { %529 = vmatpush1.bf16.msra.mxu0 %v4319_v2  ;;  %570 = vmatpush1.bf16.msra.mxu1 %v4320_v3  ;;  %v4323_v5 = vld [vmem:[#allocation2 + $0xcc] ss:$16 sps:$4 sm:$0xff]   ;;  %v4325_v6 = vld [vmem:[#allocation2 + $0xc0] ss:$16 sps:$4 sm:$0xff]   ;;  %v4326_v7 = vld [vmem:[#allocation2 + $0xc8] ss:$16 sps:$4 sm:$0xff]  }
  0x39   :  { %530 = vmatprep.subr.bf16.mxu0 %v4321_v4  ;;  %571 = vmatprep.subr.bf16.mxu1 %v4323_v5  ;;  %v4327_v8 = vld [vmem:[#allocation2 + $0xa4] ss:$16 sps:$4 sm:$0xff]   ;;  %v4329_v9 = vld [vmem:[#allocation2 + $0xac] ss:$16 sps:$4 sm:$0xff]   ;;  %v4331_v10 = vld [vmem:[#allocation2 + $0xa0] ss:$16 sps:$4 sm:$0xff]  }
  0x3a   :  { %v4332_v11 = vld [vmem:[#allocation2 + $0xa8] ss:$16 sps:$4 sm:$0xff]   ;;  %v4333_v12 = vld [vmem:[#allocation2 + $0x84] ss:$16 sps:$4 sm:$0xff]   ;;  %v4335_v13 = vld [vmem:[#allocation2 + $0x8c] ss:$16 sps:$4 sm:$0xff]  }
  0x3b   :  { %v4337_v14 = vld [vmem:[#allocation2 + $0x80] ss:$16 sps:$4 sm:$0xff]   ;;  %v4338_v15 = vld [vmem:[#allocation2 + $0x88] ss:$16 sps:$4 sm:$0xff]   ;;  %v4339_v16 = vld [vmem:[#allocation2 + $0x64] ss:$16 sps:$4 sm:$0xff]  }
  0x3c   :  { %531 = vmatpush1.bf16.msra.mxu0 %v4325_v6  ;;  %572 = vmatpush1.bf16.msra.mxu1 %v4326_v7  ;;  %v4341_v17 = vld [vmem:[#allocation2 + $0x6c] ss:$16 sps:$4 sm:$0xff]   ;;  %v4343_v18 = vld [vmem:[#allocation2 + $0x60] ss:$16 sps:$4 sm:$0xff]   ;;  %v4344_v19 = vld [vmem:[#allocation2 + $0x68] ss:$16 sps:$4 sm:$0xff]  }
  0x3d   :  { %532 = vmatprep.subr.bf16.mxu0 %v4327_v8  ;;  %573 = vmatprep.subr.bf16.mxu1 %v4329_v9  ;;  %v4345_v20 = vld [vmem:[#allocation2 + $0x44] ss:$16 sps:$4 sm:$0xff]   ;;  %v4347_v21 = vld [vmem:[#allocation2 + $0x4c] ss:$16 sps:$4 sm:$0xff]   ;;  %v4349_v22 = vld [vmem:[#allocation2 + $0x40] ss:$16 sps:$4 sm:$0xff]  }
  0x3e   :  { %v4350_v23 = vld [vmem:[#allocation2 + $0x48] ss:$16 sps:$4 sm:$0xff]   ;;  %v4351_v24 = vld [vmem:[#allocation2 + $0x24] ss:$16 sps:$4 sm:$0xff]   ;;  %v4353_v25 = vld [vmem:[#allocation2 + $0x2c] ss:$16 sps:$4 sm:$0xff]  }
  0x3f   :  { %v4355_v26 = vld [vmem:[#allocation2 + $0x20] ss:$16 sps:$4 sm:$0xff]   ;;  %v4356_v27 = vld [vmem:[#allocation2 + $0x28] ss:$16 sps:$4 sm:$0xff]   ;;  %v4357_v28 = vld [vmem:[#allocation2 + $0x4] ss:$16 sps:$4 sm:$0xff]  }
  0x40   :  { %533 = vmatpush1.bf16.msra.mxu0 %v4331_v10  ;;  %574 = vmatpush1.bf16.msra.mxu1 %v4332_v11  ;;  %v4359_v29 = vld [vmem:[#allocation2 + $0xc] ss:$16 sps:$4 sm:$0xff]   ;;  %v4361_v30 = vld [vmem:[#allocation2] ss:$16 sps:$4 sm:$0xff]   ;;  %v4362_v31 = vld [vmem:[#allocation2 + $0x8] ss:$16 sps:$4 sm:$0xff]  }
  0x41   :  { %534 = vmatprep.subr.bf16.mxu0 %v4333_v12  ;;  %575 = vmatprep.subr.bf16.mxu1 %v4335_v13  ;;  %v4363_v32 = vld [vmem:[#allocation2 + $0x1e4] ss:$16 sps:$4 sm:$0xff]   ;;  %v4365_v33 = vld [vmem:[#allocation2 + $0x1ec] ss:$16 sps:$4 sm:$0xff]   ;;  %v4367_v34 = vld [vmem:[#allocation2 + $0x1e0] ss:$16 sps:$4 sm:$0xff]  }
  0x42   :  { %v4368_v35 = vld [vmem:[#allocation2 + $0x1e8] ss:$16 sps:$4 sm:$0xff]   ;;  %v4369_v36 = vld [vmem:[#allocation2 + $0x1c4] ss:$16 sps:$4 sm:$0xff]   ;;  %v4371_v37 = vld [vmem:[#allocation2 + $0x1cc] ss:$16 sps:$4 sm:$0xff]  }
  0x43   :  { %v4373_v38 = vld [vmem:[#allocation2 + $0x1c0] ss:$16 sps:$4 sm:$0xff]   ;;  %v4374_v39 = vld [vmem:[#allocation2 + $0x1c8] ss:$16 sps:$4 sm:$0xff]   ;;  %v4375_v40 = vld [vmem:[#allocation2 + $0x1a4] ss:$16 sps:$4 sm:$0xff]  }
  0x44   :  { %535 = vmatpush1.bf16.msra.mxu0 %v4337_v14  ;;  %576 = vmatpush1.bf16.msra.mxu1 %v4338_v15  ;;  %v4377_v41 = vld [vmem:[#allocation2 + $0x1ac] ss:$16 sps:$4 sm:$0xff]   ;;  %v4379_v42 = vld [vmem:[#allocation2 + $0x1a0] ss:$16 sps:$4 sm:$0xff]   ;;  %v4380_v43 = vld [vmem:[#allocation2 + $0x1a8] ss:$16 sps:$4 sm:$0xff]  }
  0x45   :  { %536 = vmatprep.subr.bf16.mxu0 %v4339_v16  ;;  %577 = vmatprep.subr.bf16.mxu1 %v4341_v17  ;;  %v4381_v44 = vld [vmem:[#allocation2 + $0x184] ss:$16 sps:$4 sm:$0xff]   ;;  %v4383_v45 = vld [vmem:[#allocation2 + $0x18c] ss:$16 sps:$4 sm:$0xff]   ;;  %s5496_s19 = sld [smem:[#allocation12_spill]]  ;;  %vm1956_vm9 = vcmask 130048  }
  0x46   :  { %v4385_v47 = vld [vmem:[#allocation2 + $0x180] ss:$16 sps:$4 sm:$0xff]   ;;  %v4386_v49 = vld [vmem:[#allocation2 + $0x188] ss:$16 sps:$4 sm:$0xff]   ;;  %v4387_v50 = vld [vmem:[#allocation2 + $0x164] ss:$16 sps:$4 sm:$0xff]  }
  0x47   :  { %v4389_v51 = vld [vmem:[#allocation2 + $0x16c] ss:$16 sps:$4 sm:$0xff]   ;;  %v4391_v52 = vld [vmem:[#allocation2 + $0x160] ss:$16 sps:$4 sm:$0xff]   ;;  %v4392_v53 = vld [vmem:[#allocation2 + $0x168] ss:$16 sps:$4 sm:$0xff]  }
  0x48   :  { %537 = vmatpush1.bf16.msra.mxu0 %v4343_v18  ;;  %578 = vmatpush1.bf16.msra.mxu1 %v4344_v19  ;;  %v4393_v54 = vld [vmem:[#allocation2 + $0x144] ss:$16 sps:$4 sm:$0xff]   ;;  %v4395_v55 = vld [vmem:[#allocation2 + $0x14c] ss:$16 sps:$4 sm:$0xff]   ;;  %v4397_v56 = vld [vmem:[#allocation2 + $0x140] ss:$16 sps:$4 sm:$0xff]  }
  0x49   :  { %538 = vmatprep.subr.bf16.mxu0 %v4345_v20  ;;  %579 = vmatprep.subr.bf16.mxu1 %v4347_v21  ;;  %v4398_v57 = vld [vmem:[#allocation2 + $0x148] ss:$16 sps:$4 sm:$0xff]   ;;  %v4399_v58 = vld [vmem:[#allocation2 + $0x124] ss:$16 sps:$4 sm:$0xff]   ;;  %v4401_v59 = vld [vmem:[#allocation2 + $0x12c] ss:$16 sps:$4 sm:$0xff]  }
  0x4a   :  { %v4403_v60 = vld [vmem:[#allocation2 + $0x120] ss:$16 sps:$4 sm:$0xff]   ;;  %v4404_v61 = vld [vmem:[#allocation2 + $0x128] ss:$16 sps:$4 sm:$0xff]   ;;  %v4405_v62 = vld [vmem:[#allocation2 + $0x104] ss:$16 sps:$4 sm:$0xff]  }
  0x4b   :  { %v114_v46 = vld [vmem:[%s5496_s19] sm:$0xff]  ;;  %v4407_v63 = vld [vmem:[#allocation2 + $0x10c] ss:$16 sps:$4 sm:$0xff]   ;;  %v4410_v1 = vld [vmem:[#allocation2 + $0x108] ss:$16 sps:$4 sm:$0xff]   ;;  %s5497_s25 = sld [smem:[#allocation14_spill]] }
  0x4c   :  { %539 = vmatpush1.bf16.msra.mxu0 %v4349_v22  ;;  %580 = vmatpush1.bf16.msra.mxu1 %v4350_v23  ;;  %v3797_v48 = vcombine.high %v114_v46, %v114_v46  ;;  %v4409_v0 = vld [vmem:[#allocation2 + $0x100] ss:$16 sps:$4 sm:$0xff]   ;;  %v4415_v2 = vld [vmem:[#allocation4 + $0xe4] ss:$16 sps:$4 sm:$0xff]   ;;  %v3796_v4 = vcombine.low %v114_v46, %v114_v46 }
  0x4d   :  { %540 = vmatprep.subr.bf16.mxu0 %v4351_v24  ;;  %581 = vmatprep.subr.bf16.mxu1 %v4353_v25  ;;  %v4418_v3 = vld [vmem:[#allocation4 + $0x2e4] ss:$16 sps:$4 sm:$0xff]   ;;  %v4413_v5 = vld [vmem:[#allocation4 + $0xe0] ss:$16 sps:$4 sm:$0xff]  }
  0x4e   :  { %560 = vmatprep.mubr.bf16.mxu0 %v3797_v48  ;;  %601 = vmatprep.mubr.bf16.mxu1 %v3797_v48  ;;  %v4416_v6 = vld [vmem:[#allocation4 + $0x2e0] ss:$16 sps:$4 sm:$0xff]   ;;  %v4421_v7 = vld [vmem:[#allocation4 + $0xc4] ss:$16 sps:$4 sm:$0xff]  }
  0x4f   :  { %v4424_v8 = vld [vmem:[#allocation4 + $0x2c4] ss:$16 sps:$4 sm:$0xff]   ;;  %v4419_v9 = vld [vmem:[#allocation4 + $0xc0] ss:$16 sps:$4 sm:$0xff]  }
  0x50   :  { %541 = vmatpush1.bf16.msra.mxu0 %v4355_v26  ;;  %582 = vmatpush1.bf16.msra.mxu1 %v4356_v27  ;;  %v4422_v10 = vld [vmem:[#allocation4 + $0x2c0] ss:$16 sps:$4 sm:$0xff]   ;;  %v4427_v11 = vld [vmem:[#allocation4 + $0xa4] ss:$16 sps:$4 sm:$0xff]  }
  0x51   :  { %542 = vmatprep.subr.bf16.mxu0 %v4357_v28  ;;  %583 = vmatprep.subr.bf16.mxu1 %v4359_v29  ;;  %v4430_v12 = vld [vmem:[#allocation4 + $0x2a4] ss:$16 sps:$4 sm:$0xff]   ;;  %v4425_v13 = vld [vmem:[#allocation4 + $0xa0] ss:$16 sps:$4 sm:$0xff]  }
  0x52   :  { %v4428_v14 = vld [vmem:[#allocation4 + $0x2a0] ss:$16 sps:$4 sm:$0xff]   ;;  %v4433_v15 = vld [vmem:[#allocation4 + $0x84] ss:$16 sps:$4 sm:$0xff]  }
  0x53   :  { %v4436_v16 = vld [vmem:[#allocation4 + $0x284] ss:$16 sps:$4 sm:$0xff]   ;;  %v4431_v17 = vld [vmem:[#allocation4 + $0x80] ss:$16 sps:$4 sm:$0xff]  }
  0x54   :  { %543 = vmatpush1.bf16.msra.mxu0 %v4361_v30  ;;  %584 = vmatpush1.bf16.msra.mxu1 %v4362_v31  ;;  %v4434_v18 = vld [vmem:[#allocation4 + $0x280] ss:$16 sps:$4 sm:$0xff]   ;;  %v4439_v19 = vld [vmem:[#allocation4 + $0x64] ss:$16 sps:$4 sm:$0xff]  }
  0x55   :  { %544 = vmatprep.subr.bf16.mxu0 %v4363_v32  ;;  %585 = vmatprep.subr.bf16.mxu1 %v4365_v33  ;;  %v4442_v20 = vld [vmem:[#allocation4 + $0x264] ss:$16 sps:$4 sm:$0xff]   ;;  %v4437_v21 = vld [vmem:[#allocation4 + $0x60] ss:$16 sps:$4 sm:$0xff]  }
  0x56   :  { %v4440_v22 = vld [vmem:[#allocation4 + $0x260] ss:$16 sps:$4 sm:$0xff]   ;;  %v4445_v23 = vld [vmem:[#allocation4 + $0x44] ss:$16 sps:$4 sm:$0xff]  }
  0x57   :  { %v4448_v24 = vld [vmem:[#allocation4 + $0x244] ss:$16 sps:$4 sm:$0xff]   ;;  %v4443_v25 = vld [vmem:[#allocation4 + $0x40] ss:$16 sps:$4 sm:$0xff]  }
  0x58   :  { %545 = vmatpush2.bf16.msra.mxu0 %v4367_v34  ;;  %586 = vmatpush2.bf16.msra.mxu1 %v4368_v35  ;;  %v4446_v26 = vld [vmem:[#allocation4 + $0x240] ss:$16 sps:$4 sm:$0xff]   ;;  %v4451_v27 = vld [vmem:[#allocation4 + $0x24] ss:$16 sps:$4 sm:$0xff]  }
  0x59   :  { %546 = vmatprep.subr.bf16.mxu0 %v4369_v36  ;;  %587 = vmatprep.subr.bf16.mxu1 %v4371_v37  ;;  %v4454_v28 = vld [vmem:[#allocation4 + $0x224] ss:$16 sps:$4 sm:$0xff]   ;;  %v4449_v29 = vld [vmem:[#allocation4 + $0x20] ss:$16 sps:$4 sm:$0xff]  }
  0x5a   :  { %v4452_v30 = vld [vmem:[#allocation4 + $0x220] ss:$16 sps:$4 sm:$0xff]   ;;  %v4457_v31 = vld [vmem:[#allocation4 + $0x4] ss:$16 sps:$4 sm:$0xff]  }
  0x5b   :  { %v4460_v32 = vld [vmem:[#allocation4 + $0x204] ss:$16 sps:$4 sm:$0xff]   ;;  %v4455_v33 = vld [vmem:[#allocation4] ss:$16 sps:$4 sm:$0xff]  }
  0x5c   :  { %547 = vmatpush2.bf16.msra.mxu0 %v4373_v38  ;;  %588 = vmatpush2.bf16.msra.mxu1 %v4374_v39  ;;  %v4458_v34 = vld [vmem:[#allocation4 + $0x200] ss:$16 sps:$4 sm:$0xff]   ;;  %v4463_v35 = vld [vmem:[#allocation4 + $0x1e4] ss:$16 sps:$4 sm:$0xff]  }
  0x5d   :  { %548 = vmatprep.subr.bf16.mxu0 %v4375_v40  ;;  %589 = vmatprep.subr.bf16.mxu1 %v4377_v41  ;;  %v4466_v36 = vld [vmem:[#allocation4 + $0x3e4] ss:$16 sps:$4 sm:$0xff]   ;;  %v4461_v37 = vld [vmem:[#allocation4 + $0x1e0] ss:$16 sps:$4 sm:$0xff]  }
  0x5e   :  { %v4464_v38 = vld [vmem:[#allocation4 + $0x3e0] ss:$16 sps:$4 sm:$0xff]   ;;  %v4469_v39 = vld [vmem:[#allocation4 + $0x1c4] ss:$16 sps:$4 sm:$0xff]  }
  0x5f   :  { %v4472_v40 = vld [vmem:[#allocation4 + $0x3c4] ss:$16 sps:$4 sm:$0xff]   ;;  %v4467_v41 = vld [vmem:[#allocation4 + $0x1c0] ss:$16 sps:$4 sm:$0xff]  }
  0x60   :  { %549 = vmatpush2.bf16.msra.mxu0 %v4379_v42  ;;  %590 = vmatpush2.bf16.msra.mxu1 %v4380_v43  ;;  %v4470_v42 = vld [vmem:[#allocation4 + $0x3c0] ss:$16 sps:$4 sm:$0xff]   ;;  %v4475_v43 = vld [vmem:[#allocation4 + $0x1a4] ss:$16 sps:$4 sm:$0xff]  }
  0x61   :  { %550 = vmatprep.subr.bf16.mxu0 %v4381_v44  ;;  %591 = vmatprep.subr.bf16.mxu1 %v4383_v45  ;;  %v4478_v44 = vld [vmem:[#allocation4 + $0x3a4] ss:$16 sps:$4 sm:$0xff]   ;;  %v4473_v45 = vld [vmem:[#allocation4 + $0x1a0] ss:$16 sps:$4 sm:$0xff]  }
  0x62   :  { %v4476_v46 = vld [vmem:[#allocation4 + $0x3a0] ss:$16 sps:$4 sm:$0xff]   ;;  %v4484_v48 = vld [vmem:[#allocation4 + $0x384] ss:$16 sps:$4 sm:$0xff]  }
  0x64   :  { %551 = vmatpush2.bf16.msra.mxu0 %v4385_v47  ;;  %592 = vmatpush2.bf16.msra.mxu1 %v4386_v49  ;;  %v4481_v47 = vld [vmem:[#allocation4 + $0x184] ss:$16 sps:$4 sm:$0xff]   ;;  %v4479_v49 = vld [vmem:[#allocation4 + $0x180] ss:$16 sps:$4 sm:$0xff]  }
  0x65   :  { %552 = vmatprep.subr.bf16.mxu0 %v4387_v50  ;;  %593 = vmatprep.subr.bf16.mxu1 %v4389_v51  ;;  %v4482_v50 = vld [vmem:[#allocation4 + $0x380] ss:$16 sps:$4 sm:$0xff]   ;;  %v4487_v51 = vld [vmem:[#allocation4 + $0x164] ss:$16 sps:$4 sm:$0xff]  }
  0x68   :  { %553 = vmatpush2.bf16.msra.mxu0 %v4391_v52  ;;  %594 = vmatpush2.bf16.msra.mxu1 %v4392_v53  ;;  %v4490_v52 = vld [vmem:[#allocation4 + $0x364] ss:$16 sps:$4 sm:$0xff]   ;;  %v4485_v53 = vld [vmem:[#allocation4 + $0x160] ss:$16 sps:$4 sm:$0xff]  }
  0x69   :  { %554 = vmatprep.subr.bf16.mxu0 %v4393_v54  ;;  %595 = vmatprep.subr.bf16.mxu1 %v4395_v55  ;;  %v4488_v54 = vld [vmem:[#allocation4 + $0x360] ss:$16 sps:$4 sm:$0xff]   ;;  %v4493_v55 = vld [vmem:[#allocation4 + $0x144] ss:$16 sps:$4 sm:$0xff]  }
  0x6c   :  { %555 = vmatpush2.bf16.msra.mxu0 %v4397_v56  ;;  %596 = vmatpush2.bf16.msra.mxu1 %v4398_v57  ;;  %v4496_v56 = vld [vmem:[#allocation4 + $0x344] ss:$16 sps:$4 sm:$0xff]   ;;  %v4491_v57 = vld [vmem:[#allocation4 + $0x140] ss:$16 sps:$4 sm:$0xff]  }
  0x6d   :  { %556 = vmatprep.subr.bf16.mxu0 %v4399_v58  ;;  %597 = vmatprep.subr.bf16.mxu1 %v4401_v59  ;;  %v4494_v58 = vld [vmem:[#allocation4 + $0x340] ss:$16 sps:$4 sm:$0xff]   ;;  %v4499_v59 = vld [vmem:[#allocation4 + $0x124] ss:$16 sps:$4 sm:$0xff]  }
  0x70   :  { %557 = vmatpush2.bf16.msra.mxu0 %v4403_v60  ;;  %598 = vmatpush2.bf16.msra.mxu1 %v4404_v61  ;;  %v4502_v60 = vld [vmem:[#allocation4 + $0x324] ss:$16 sps:$4 sm:$0xff]   ;;  %v4497_v61 = vld [vmem:[#allocation4 + $0x120] ss:$16 sps:$4 sm:$0xff]  }
  0x71   :  { %558 = vmatprep.subr.bf16.mxu0 %v4405_v62  ;;  %599 = vmatprep.subr.bf16.mxu1 %v4407_v63  ;;  %v4500_v62 = vld [vmem:[#allocation4 + $0x320] ss:$16 sps:$4 sm:$0xff]   ;;  %v4505_v63 = vld [vmem:[#allocation4 + $0x104] ss:$16 sps:$4 sm:$0xff]  }
  0x74   :  { %559 = vmatpush2.bf16.msra.mxu0 %v4409_v0  ;;  %600 = vmatpush2.bf16.msra.mxu1 %v4410_v1  ;;  %v4508_v0 = vld [vmem:[#allocation4 + $0x304] ss:$16 sps:$4 sm:$0xff]   ;;  %v4503_v1 = vld [vmem:[#allocation4 + $0x100] ss:$16 sps:$4 sm:$0xff]  }
  0x75   :  { %1416 = vmatprep.subr.bf16.mxu0 %v4415_v2  ;;  %1457 = vmatprep.subr.bf16.mxu1 %v4418_v3  ;;  %v4506_v2 = vld [vmem:[#allocation4 + $0x300] ss:$16 sps:$4 sm:$0xff]   ;;  %v4511_v3 = vld [vmem:[#allocation4 + $0xec] ss:$16 sps:$4 sm:$0xff]  }
  0x77   :  { %561 = vmatmul.mubr.bf16.vlgmr.msra.gmra.mxu0 %v3796_v4  ;;  %602 = vmatmul.mubr.bf16.vlgmr.msra.gmra.mxu1 %v3796_v4  ;;  %v4514_v4 = vld [vmem:[#allocation4 + $0x2ec] ss:$16 sps:$4 sm:$0xff]  }
  0x78   :  { %1417 = vmatpush1.bf16.msra.mxu0 %v4413_v5  ;;  %1458 = vmatpush1.bf16.msra.mxu1 %v4416_v6  ;;  %v181_v5 = vlaneseq }
  0x79   :  { %1418 = vmatprep.subr.bf16.mxu0 %v4421_v7  ;;  %1459 = vmatprep.subr.bf16.mxu1 %v4424_v8 }
  0x7a   :  { %v182_v6 = vshrl.u32 %v181_v5, 7 }
  0x7c   :  { %1419 = vmatpush1.bf16.msra.mxu0 %v4419_v9  ;;  %1460 = vmatpush1.bf16.msra.mxu1 %v4422_v10  ;;  %v5152_v7 = vsub.s32 0, %v182_v6  ;;  %v5154_v8 = vsub.s32 2, %v182_v6  ;;  %v179_v9 = vld [vmem:[%s5497_s25] sm:$0xf]  ;;  %v5159_v10 = vsub.s32 1, %v182_v6 }
  0x7d   :  { %1420 = vmatprep.subr.bf16.mxu0 %v4427_v11  ;;  %1461 = vmatprep.subr.bf16.mxu1 %v4430_v12  ;;  %v5161_v11 = vsub.s32 3, %v182_v6  ;;  %v4554_v6 = vld [vmem:[#allocation4 + $0x208] ss:$16 sps:$4 sm:$0xff]  }
  0x7e   :  { %v184_v12 = vrot.slane %v179_v9, %v5152_v7 }
  0x80   :  { %1421 = vmatpush1.bf16.msra.mxu0 %v4425_v13  ;;  %1462 = vmatpush1.bf16.msra.mxu1 %v4428_v14  ;;  %v192_v13 = vrot.slane %v179_v9, %v5154_v8 }
  0x81   :  { %1422 = vmatprep.subr.bf16.mxu0 %v4433_v15  ;;  %1463 = vmatprep.subr.bf16.mxu1 %v4436_v16  ;;  %v188_v16 = vrot.slane %v179_v9, %v5159_v10 }
  0x84   :  { %1423 = vmatpush1.bf16.msra.mxu0 %v4431_v17  ;;  %1464 = vmatpush1.bf16.msra.mxu1 %v4434_v18  ;;  %v196_v17 = vrot.slane %v179_v9, %v5161_v11  ;;  %v4559_v9 = vld [vmem:[#allocation4 + $0x1ec] ss:$16 sps:$4 sm:$0xff]  }
  0x85   :  { %1424 = vmatprep.subr.bf16.mxu0 %v4439_v19  ;;  %1465 = vmatprep.subr.bf16.mxu1 %v4442_v20 }
  0x88   :  { %1425 = vmatpush1.bf16.msra.mxu0 %v4437_v21  ;;  %1466 = vmatpush1.bf16.msra.mxu1 %v4440_v22 }
  0x89   :  { %1426 = vmatprep.subr.bf16.mxu0 %v4445_v23  ;;  %1467 = vmatprep.subr.bf16.mxu1 %v4448_v24 }
  0x8c   :  { %1427 = vmatpush1.bf16.msra.mxu0 %v4443_v25  ;;  %1468 = vmatpush1.bf16.msra.mxu1 %v4446_v26 }
  0x8d   :  { %1428 = vmatprep.subr.bf16.mxu0 %v4451_v27  ;;  %1469 = vmatprep.subr.bf16.mxu1 %v4454_v28 }
  0x90   :  { %1429 = vmatpush1.bf16.msra.mxu0 %v4449_v29  ;;  %1470 = vmatpush1.bf16.msra.mxu1 %v4452_v30 }
  0x91   :  { %1430 = vmatprep.subr.bf16.mxu0 %v4457_v31  ;;  %1471 = vmatprep.subr.bf16.mxu1 %v4460_v32 }
  0x94   :  { %1431 = vmatpush1.bf16.msra.mxu0 %v4455_v33  ;;  %1472 = vmatpush1.bf16.msra.mxu1 %v4458_v34 }
  0x95   :  { %1432 = vmatprep.subr.bf16.mxu0 %v4463_v35  ;;  %1473 = vmatprep.subr.bf16.mxu1 %v4466_v36 }
  0x98   :  { %1433 = vmatpush2.bf16.msra.mxu0 %v4461_v37  ;;  %1474 = vmatpush2.bf16.msra.mxu1 %v4464_v38  ;;  %v4509_v37 = vld [vmem:[#allocation4 + $0xe8] ss:$16 sps:$4 sm:$0xff]  }
  0x99   :  { %1434 = vmatprep.subr.bf16.mxu0 %v4469_v39  ;;  %1475 = vmatprep.subr.bf16.mxu1 %v4472_v40  ;;  %v4512_v40 = vld [vmem:[#allocation4 + $0x2e8] ss:$16 sps:$4 sm:$0xff]  }
  0x9c   :  { %1435 = vmatpush2.bf16.msra.mxu0 %v4467_v41  ;;  %1476 = vmatpush2.bf16.msra.mxu1 %v4470_v42  ;;  %v4517_v42 = vld [vmem:[#allocation4 + $0xcc] ss:$16 sps:$4 sm:$0xff]  }
  0x9d   :  { %1436 = vmatprep.subr.bf16.mxu0 %v4475_v43  ;;  %1477 = vmatprep.subr.bf16.mxu1 %v4478_v44  ;;  %v4520_v43 = vld [vmem:[#allocation4 + $0x2cc] ss:$16 sps:$4 sm:$0xff]   ;;  %v4515_v44 = vld [vmem:[#allocation4 + $0xc8] ss:$16 sps:$4 sm:$0xff]  }
  0xa0   :  { %1437 = vmatpush2.bf16.msra.mxu0 %v4473_v45  ;;  %1478 = vmatpush2.bf16.msra.mxu1 %v4476_v46  ;;  %v4518_v45 = vld [vmem:[#allocation4 + $0x2c8] ss:$16 sps:$4 sm:$0xff]   ;;  %v4523_v46 = vld [vmem:[#allocation4 + $0xac] ss:$16 sps:$4 sm:$0xff]  }
  0xa1   :  { %1438 = vmatprep.subr.bf16.mxu0 %v4481_v47  ;;  %1479 = vmatprep.subr.bf16.mxu1 %v4484_v48  ;;  %v4526_v47 = vld [vmem:[#allocation4 + $0x2ac] ss:$16 sps:$4 sm:$0xff]   ;;  %v4521_v48 = vld [vmem:[#allocation4 + $0xa8] ss:$16 sps:$4 sm:$0xff]  }
  0xa4   :  { %1439 = vmatpush2.bf16.msra.mxu0 %v4479_v49  ;;  %1480 = vmatpush2.bf16.msra.mxu1 %v4482_v50  ;;  %v4524_v49 = vld [vmem:[#allocation4 + $0x2a8] ss:$16 sps:$4 sm:$0xff]   ;;  %v4529_v50 = vld [vmem:[#allocation4 + $0x8c] ss:$16 sps:$4 sm:$0xff]  }
  0xa5   :  { %1440 = vmatprep.subr.bf16.mxu0 %v4487_v51  ;;  %1481 = vmatprep.subr.bf16.mxu1 %v4490_v52  ;;  %v4532_v51 = vld [vmem:[#allocation4 + $0x28c] ss:$16 sps:$4 sm:$0xff]   ;;  %v4527_v52 = vld [vmem:[#allocation4 + $0x88] ss:$16 sps:$4 sm:$0xff]  }
  0xa8   :  { %1441 = vmatpush2.bf16.msra.mxu0 %v4485_v53  ;;  %1482 = vmatpush2.bf16.msra.mxu1 %v4488_v54  ;;  %v4530_v53 = vld [vmem:[#allocation4 + $0x288] ss:$16 sps:$4 sm:$0xff]   ;;  %v4535_v54 = vld [vmem:[#allocation4 + $0x6c] ss:$16 sps:$4 sm:$0xff]  }
  0xa9   :  { %1442 = vmatprep.subr.bf16.mxu0 %v4493_v55  ;;  %1483 = vmatprep.subr.bf16.mxu1 %v4496_v56  ;;  %v4538_v55 = vld [vmem:[#allocation4 + $0x26c] ss:$16 sps:$4 sm:$0xff]   ;;  %v4533_v56 = vld [vmem:[#allocation4 + $0x68] ss:$16 sps:$4 sm:$0xff]  }
  0xac   :  { %1443 = vmatpush2.bf16.msra.mxu0 %v4491_v57  ;;  %1484 = vmatpush2.bf16.msra.mxu1 %v4494_v58  ;;  %v4536_v57 = vld [vmem:[#allocation4 + $0x268] ss:$16 sps:$4 sm:$0xff]   ;;  %v4541_v58 = vld [vmem:[#allocation4 + $0x4c] ss:$16 sps:$4 sm:$0xff]  }
  0xad   :  { %1444 = vmatprep.subr.bf16.mxu0 %v4499_v59  ;;  %1485 = vmatprep.subr.bf16.mxu1 %v4502_v60  ;;  %v4544_v59 = vld [vmem:[#allocation4 + $0x24c] ss:$16 sps:$4 sm:$0xff]   ;;  %v4539_v60 = vld [vmem:[#allocation4 + $0x48] ss:$16 sps:$4 sm:$0xff]  }
  0xb0   :  { %1445 = vmatpush2.bf16.msra.mxu0 %v4497_v61  ;;  %1486 = vmatpush2.bf16.msra.mxu1 %v4500_v62  ;;  %v4542_v61 = vld [vmem:[#allocation4 + $0x248] ss:$16 sps:$4 sm:$0xff]   ;;  %v4547_v62 = vld [vmem:[#allocation4 + $0x2c] ss:$16 sps:$4 sm:$0xff]  }
  0xb1   :  { %1446 = vmatprep.subr.bf16.mxu0 %v4505_v63  ;;  %1487 = vmatprep.subr.bf16.mxu1 %v4508_v0  ;;  %v4550_v63 = vld [vmem:[#allocation4 + $0x22c] ss:$16 sps:$4 sm:$0xff]   ;;  %v4545_v0 = vld [vmem:[#allocation4 + $0x28] ss:$16 sps:$4 sm:$0xff]  }
  0xb4   :  { %1447 = vmatpush2.bf16.msra.mxu0 %v4503_v1  ;;  %1488 = vmatpush2.bf16.msra.mxu1 %v4506_v2  ;;  %v4548_v1 = vld [vmem:[#allocation4 + $0x228] ss:$16 sps:$4 sm:$0xff]   ;;  %v4553_v2 = vld [vmem:[#allocation4 + $0xc] ss:$16 sps:$4 sm:$0xff]  }
  0xb5   :  { %1498 = vmatprep.subr.bf16.mxu0 %v4511_v3  ;;  %1539 = vmatprep.subr.bf16.mxu1 %v4514_v4  ;;  %v4556_v3 = vld [vmem:[#allocation4 + $0x20c] ss:$16 sps:$4 sm:$0xff]   ;;  %v4551_v4 = vld [vmem:[#allocation4 + $0x8] ss:$16 sps:$4 sm:$0xff]  }
 0x137   :  { %v562_v14 = vpop.f32.mrf.mxu0  ;;  %v603_v15 = vpop.f32.mrf.mxu1 }
 0x138   :  { %v563_v18 = vadd.f32 %v562_v14, %v184_v12  ;;  %v604_v19 = vadd.f32 %v603_v15, %v192_v13  ;;  %v4562_v12 = vld [vmem:[#allocation4 + $0x3ec] ss:$16 sps:$4 sm:$0xff]   ;;  %v4557_v13 = vld [vmem:[#allocation4 + $0x1e8] ss:$16 sps:$4 sm:$0xff]  }
 0x139   :  { %v564_v20 = vpop.f32.mrf.mxu0  ;;  %v605_v21 = vpop.f32.mrf.mxu1  ;;  %v4560_v14 = vld [vmem:[#allocation4 + $0x3e8] ss:$16 sps:$4 sm:$0xff]   ;;  %v4565_v15 = vld [vmem:[#allocation4 + $0x1cc] ss:$16 sps:$4 sm:$0xff]  }
 0x13a   :  { %v614_v22 = vmul.f32 0.01, %v563_v18  ;;  %vm610_vm0 = vcmp.gt.f32.partialorder %v563_v18, 0.0  ;;  %v616_v23 = vmul.f32 0.01, %v604_v19  ;;  %v565_v24 = vadd.f32 %v564_v20, %v188_v16 }
 0x13b   :  { %v606_v25 = vadd.f32 %v605_v21, %v196_v17  ;;  %v566_v26 = vpop.f32.mrf.mxu0  ;;  %v607_v27 = vpop.f32.mrf.mxu1  ;;  %vm612_vm1 = vcmp.gt.f32.partialorder %v604_v19, 0.0  ;;  %v4568_v16 = vld [vmem:[#allocation4 + $0x3cc] ss:$16 sps:$4 sm:$0xff]   ;;  %v4563_v17 = vld [vmem:[#allocation4 + $0x1c8] ss:$16 sps:$4 sm:$0xff]  }
 0x13c   :  { %vm611_vm2 = vcmp.gt.f32.partialorder %v565_v24, 0.0  ;;  %v615_v28 = vmul.f32 0.01, %v565_v24  ;;  %v618_v31 = vsel %vm610_vm0, %v563_v18, %v614_v22  ;;  %v620_v33 = vsel %vm612_vm1, %v604_v19, %v616_v23  ;;  %v4566_v18 = vld [vmem:[#allocation4 + $0x3c8] ss:$16 sps:$4 sm:$0xff]  }
 0x13d   :  { %v567_v29 = vpop.f32.mrf.mxu0  ;;  %v608_v30 = vpop.f32.mrf.mxu1  ;;  %vm613_vm3 = vcmp.gt.f32.partialorder %v606_v25, 0.0  ;;  %v617_v32 = vmul.f32 0.01, %v606_v25  ;;  %v5167_v38 = vpack.c.bf16 %v618_v31, %v618_v31  ;;  %v5169_v41 = vpack.c.bf16 %v620_v33, %v620_v33  ;;  %v4571_v19 = vld [vmem:[#allocation4 + $0x1ac] ss:$16 sps:$4 sm:$0xff]  }
 0x13e   :  { %v619_v34 = vsel %vm611_vm2, %v565_v24, %v615_v28  ;;  %v4574_v20 = vld [vmem:[#allocation4 + $0x3ac] ss:$16 sps:$4 sm:$0xff]   ;;  %v4569_v21 = vld [vmem:[#allocation4 + $0x1a8] ss:$16 sps:$4 sm:$0xff]  }
 0x13f   :  { %v623_v35 = vpack.c.bf16 %v619_v34, %v619_v34  ;;  %v621_v36 = vsel %vm613_vm3, %v606_v25, %v617_v32  ;;  %v4572_v22 = vld [vmem:[#allocation4 + $0x3a8] ss:$16 sps:$4 sm:$0xff]   ;;  %v4577_v23 = vld [vmem:[#allocation4 + $0x18c] ss:$16 sps:$4 sm:$0xff]  }
 0x140   :  { %v625_v39 = vpack.c.bf16 %v621_v36, %v621_v36  ;;  %v4580_v24 = vld [vmem:[#allocation4 + $0x38c] ss:$16 sps:$4 sm:$0xff]   ;;  %v4575_v25 = vld [vmem:[#allocation4 + $0x188] ss:$16 sps:$4 sm:$0xff]  }
 0x141   :  { %1448 = vmatprep.mubr.bf16.mxu0 %v623_v35  ;;  %v4578_v26 = vld [vmem:[#allocation4 + $0x388] ss:$16 sps:$4 sm:$0xff]   ;;  %v4583_v27 = vld [vmem:[#allocation4 + $0x16c] ss:$16 sps:$4 sm:$0xff]  }
 0x142   :  { %1489 = vmatprep.mubr.bf16.mxu1 %v625_v39  ;;  %1449 = vmatmul.mubr.bf16.vlgmr.msra.gmra.mxu0 %v5167_v38  ;;  %v4586_v28 = vld [vmem:[#allocation4 + $0x36c] ss:$16 sps:$4 sm:$0xff]   ;;  %v4581_v29 = vld [vmem:[#allocation4 + $0x168] ss:$16 sps:$4 sm:$0xff]  }
 0x143   :  { %1490 = vmatmul.mubr.bf16.vlgmr.msra.gmra.mxu1 %v5169_v41  ;;  %1499 = vmatpush1.bf16.msra.mxu0 %v4509_v37  ;;  %v4584_v30 = vld [vmem:[#allocation4 + $0x368] ss:$16 sps:$4 sm:$0xff]   ;;  %v4589_v31 = vld [vmem:[#allocation4 + $0x14c] ss:$16 sps:$4 sm:$0xff]  }
 0x144   :  { %1540 = vmatpush1.bf16.msra.mxu1 %v4512_v40  ;;  %1530 = vmatprep.mubr.bf16.mxu0 %v623_v35  ;;  %v4592_v32 = vld [vmem:[#allocation4 + $0x34c] ss:$16 sps:$4 sm:$0xff]   ;;  %v4587_v33 = vld [vmem:[#allocation4 + $0x148] ss:$16 sps:$4 sm:$0xff]  }
 0x145   :  { %1571 = vmatprep.mubr.bf16.mxu1 %v625_v39  ;;  %1500 = vmatprep.subr.bf16.mxu0 %v4517_v42  ;;  %v4590_v34 = vld [vmem:[#allocation4 + $0x348] ss:$16 sps:$4 sm:$0xff]   ;;  %v4595_v35 = vld [vmem:[#allocation4 + $0x12c] ss:$16 sps:$4 sm:$0xff]  }
 0x146   :  { %1541 = vmatprep.subr.bf16.mxu1 %v4520_v43  ;;  %v4598_v36 = vld [vmem:[#allocation4 + $0x32c] ss:$16 sps:$4 sm:$0xff]   ;;  %v4593_v37 = vld [vmem:[#allocation4 + $0x128] ss:$16 sps:$4 sm:$0xff]  }
 0x147   :  { %1501 = vmatpush1.bf16.msra.mxu0 %v4515_v44  ;;  %v4596_v39 = vld [vmem:[#allocation4 + $0x328] ss:$16 sps:$4 sm:$0xff]   ;;  %v4601_v40 = vld [vmem:[#allocation4 + $0x10c] ss:$16 sps:$4 sm:$0xff]  }
 0x148   :  { %1542 = vmatpush1.bf16.msra.mxu1 %v4518_v45  ;;  %1502 = vmatprep.subr.bf16.mxu0 %v4523_v46  ;;  %v4604_v42 = vld [vmem:[#allocation4 + $0x30c] ss:$16 sps:$4 sm:$0xff]   ;;  %v4599_v43 = vld [vmem:[#allocation4 + $0x108] ss:$16 sps:$4 sm:$0xff]  }
 0x149   :  { %1543 = vmatprep.subr.bf16.mxu1 %v4526_v47  ;;  %v4602_v44 = vld [vmem:[#allocation4 + $0x308] ss:$16 sps:$4 sm:$0xff]   ;;  %v4607_v47 = vld [vmem:[%s5478_s5 + $0x70] sm:$0xff]  }
 0x14a   :  { %v4605_v45 = vld [vmem:[%s5478_s5 + $0x78] sm:$0xff]  }
 0x14b   :  { %1503 = vmatpush1.bf16.msra.mxu0 %v4521_v48  ;;  %v4606_v46 = vld [vmem:[%s5478_s5 + $0x38] sm:$0xff]   ;;  %v4608_v48 = vld [vmem:[%s5478_s5 + $0x30] sm:$0xff]  }
 0x14c   :  { %1544 = vmatpush1.bf16.msra.mxu1 %v4524_v49  ;;  %1504 = vmatprep.subr.bf16.mxu0 %v4529_v50  ;;  %v4609_v49 = vld [vmem:[%s5478_s5 + $0x68] sm:$0xff]  }
 0x14d   :  { %1545 = vmatprep.subr.bf16.mxu1 %v4532_v51  ;;  %v4610_v50 = vld [vmem:[%s5478_s5 + $0x28] sm:$0xff]   ;;  %v4613_v51 = vld [vmem:[%s5478_s5 + $0x58] sm:$0xff]  }
 0x14f   :  { %1505 = vmatpush1.bf16.msra.mxu0 %v4527_v52  ;;  %v4614_v52 = vld [vmem:[%s5478_s5 + $0x18] sm:$0xff]  }
 0x150   :  { %1546 = vmatpush1.bf16.msra.mxu1 %v4530_v53  ;;  %1506 = vmatprep.subr.bf16.mxu0 %v4535_v54  ;;  %v4621_v53 = vld [vmem:[%s5478_s5 + $0xf8] sm:$0xff]  }
 0x151   :  { %1547 = vmatprep.subr.bf16.mxu1 %v4538_v55  ;;  %v4622_v54 = vld [vmem:[%s5478_s5 + $0xb8] sm:$0xff]   ;;  %v4623_v55 = vld [vmem:[%s5478_s5 + $0xf0] sm:$0xff]  }
 0x153   :  { %1507 = vmatpush1.bf16.msra.mxu0 %v4533_v56  ;;  %v4615_v56 = vld [vmem:[%s5478_s5 + $0x50] sm:$0xff]  }
 0x154   :  { %1548 = vmatpush1.bf16.msra.mxu1 %v4536_v57  ;;  %1508 = vmatprep.subr.bf16.mxu0 %v4541_v58  ;;  %v4624_v57 = vld [vmem:[%s5478_s5 + $0xb0] sm:$0xff]  }
 0x155   :  { %1549 = vmatprep.subr.bf16.mxu1 %v4544_v59  ;;  %v4616_v58 = vld [vmem:[%s5478_s5 + $0x10] sm:$0xff]   ;;  %v4625_v59 = vld [vmem:[%s5478_s5 + $0xe8] sm:$0xff]  }
 0x157   :  { %1509 = vmatpush1.bf16.msra.mxu0 %v4539_v60  ;;  %v4617_v60 = vld [vmem:[%s5478_s5 + $0x48] sm:$0xff]  }
 0x158   :  { %1550 = vmatpush1.bf16.msra.mxu1 %v4542_v61  ;;  %1510 = vmatprep.subr.bf16.mxu0 %v4547_v62  ;;  %v4626_v61 = vld [vmem:[%s5478_s5 + $0xa8] sm:$0xff]  }
 0x159   :  { %1551 = vmatprep.subr.bf16.mxu1 %v4550_v63  ;;  %v4618_v62 = vld [vmem:[%s5478_s5 + $0x8] sm:$0xff]   ;;  %v4627_v63 = vld [vmem:[%s5478_s5 + $0xe0] sm:$0xff]  }
 0x15b   :  { %1511 = vmatpush1.bf16.msra.mxu0 %v4545_v0  ;;  %v4619_v0 = vld [vmem:[%s5478_s5 + $0x40] sm:$0xff]  }
 0x15c   :  { %1552 = vmatpush1.bf16.msra.mxu1 %v4548_v1  ;;  %1512 = vmatprep.subr.bf16.mxu0 %v4553_v2  ;;  %v4628_v1 = vld [vmem:[%s5478_s5 + $0xa0] sm:$0xff]  }
 0x15d   :  { %1553 = vmatprep.subr.bf16.mxu1 %v4556_v3  ;;  %v4620_v2 = vld [vmem:[%s5478_s5] sm:$0xff]   ;;  %v4629_v3 = vld [vmem:[%s5478_s5 + $0xd8] sm:$0xff]  }
 0x15f   :  { %1513 = vmatpush1.bf16.msra.mxu0 %v4551_v4  ;;  %v4630_v4 = vld [vmem:[%s5478_s5 + $0x98] sm:$0xff]  }
 0x160   :  { %1554 = vmatpush1.bf16.msra.mxu1 %v4554_v6  ;;  %1514 = vmatprep.subr.bf16.mxu0 %v4559_v9  ;;  %v4631_v6 = vld [vmem:[%s5478_s5 + $0xd0] sm:$0xff]  }
 0x161   :  { %1555 = vmatprep.subr.bf16.mxu1 %v4562_v12  ;;  %v4632_v9 = vld [vmem:[%s5478_s5 + $0x90] sm:$0xff]   ;;  %v4633_v12 = vld [vmem:[%s5478_s5 + $0xc8] sm:$0xff]  }
 0x163   :  { %1515 = vmatpush2.bf16.msra.mxu0 %v4557_v13  ;;  %v4634_v13 = vld [vmem:[%s5478_s5 + $0x88] sm:$0xff]  }
 0x164   :  { %1556 = vmatpush2.bf16.msra.mxu1 %v4560_v14  ;;  %1516 = vmatprep.subr.bf16.mxu0 %v4565_v15  ;;  %v4635_v14 = vld [vmem:[%s5478_s5 + $0xc0] sm:$0xff]  }
 0x165   :  { %1557 = vmatprep.subr.bf16.mxu1 %v4568_v16  ;;  %v4636_v15 = vld [vmem:[%s5478_s5 + $0x80] sm:$0xff]  }
 0x166   :  { %v4024_v16 = vld [vmem:[%s5489_s16] ss:$0 sm:$0xff] }
 0x167   :  { %1517 = vmatpush2.bf16.msra.mxu0 %v4563_v17  ;;  %1977 = vrot.lane.b32.xlu0 %v4024_v16, %s5030_s1  ;;  %v754_v17 = vld [vmem:[%s5477_s4] sm:$0xf] }
 0x168   :  { %1558 = vmatpush2.bf16.msra.mxu1 %v4566_v18  ;;  %1518 = vmatprep.subr.bf16.mxu0 %v4571_v19  ;;  %v759_v18 = vrot.slane %v754_v17, %v5152_v7  ;;  %v763_v19 = vrot.slane %v754_v17, %v5159_v10 }
 0x169   :  { %1559 = vmatprep.subr.bf16.mxu1 %v4574_v20 }
 0x16b   :  { %1519 = vmatpush2.bf16.msra.mxu0 %v4569_v21 }
 0x16c   :  { %1560 = vmatpush2.bf16.msra.mxu1 %v4572_v22  ;;  %1520 = vmatprep.subr.bf16.mxu0 %v4577_v23 }
 0x16d   :  { %1561 = vmatprep.subr.bf16.mxu1 %v4580_v24 }
 0x16f   :  { %1521 = vmatpush2.bf16.msra.mxu0 %v4575_v25 }
 0x170   :  { %1562 = vmatpush2.bf16.msra.mxu1 %v4578_v26  ;;  %1522 = vmatprep.subr.bf16.mxu0 %v4583_v27 }
 0x171   :  { %1563 = vmatprep.subr.bf16.mxu1 %v4586_v28 }
 0x173   :  { %1523 = vmatpush2.bf16.msra.mxu0 %v4581_v29 }
 0x174   :  { %1564 = vmatpush2.bf16.msra.mxu1 %v4584_v30  ;;  %1524 = vmatprep.subr.bf16.mxu0 %v4589_v31 }
 0x175   :  { %1565 = vmatprep.subr.bf16.mxu1 %v4592_v32 }
 0x177   :  { %1525 = vmatpush2.bf16.msra.mxu0 %v4587_v33 }
 0x178   :  { %1566 = vmatpush2.bf16.msra.mxu1 %v4590_v34  ;;  %1526 = vmatprep.subr.bf16.mxu0 %v4595_v35 }
 0x179   :  { %1567 = vmatprep.subr.bf16.mxu1 %v4598_v36 }
 0x17b   :  { %1527 = vmatpush2.bf16.msra.mxu0 %v4593_v37 }
 0x17c   :  { %1568 = vmatpush2.bf16.msra.mxu1 %v4596_v39  ;;  %1528 = vmatprep.subr.bf16.mxu0 %v4601_v40  ;;  %v767_v39 = vrot.slane %v754_v17, %v5154_v8  ;;  %v771_v40 = vrot.slane %v754_v17, %v5161_v11 }
 0x17d   :  { %1569 = vmatprep.subr.bf16.mxu1 %v4604_v42 }
 0x17f   :  { %1529 = vmatpush2.bf16.msra.mxu0 %v4599_v43 }
 0x180   :  { %1570 = vmatpush2.bf16.msra.mxu1 %v4602_v44  ;;  %4225 = vmatprep.subr.bf16.mxu0 %v4605_v45 }
 0x181   :  { %4247 = vmatprep.subr.bf16.mxu1 %v4621_v53 }
 0x182   :  { %1531 = vmatmul.mubr.bf16.vlgmr.msra.gmra.mxu0 %v5167_v38  ;;  %v4611_v38 = vld [vmem:[%s5478_s5 + $0x60] sm:$0xff]  }
 0x183   :  { %1572 = vmatmul.mubr.bf16.vlgmr.msra.gmra.mxu1 %v5169_v41  ;;  %4226 = vmatpush3.bf16.msra.mxu0 %v4606_v46  ;;  %v4612_v41 = vld [vmem:[%s5478_s5 + $0x20] sm:$0xff]  }
 0x184   :  { %4227 = vmatprep.subr.bf16.mxu0 %v4607_v47  ;;  %4248 = vmatpush3.bf16.msra.mxu1 %v4622_v54 }
 0x185   :  { %4249 = vmatprep.subr.bf16.mxu1 %v4623_v55 }
 0x187   :  { %4228 = vmatpush3.bf16.msra.mxu0 %v4608_v48 }
 0x188   :  { %4229 = vmatprep.subr.bf16.mxu0 %v4609_v49  ;;  %4250 = vmatpush3.bf16.msra.mxu1 %v4624_v57 }
 0x189   :  { %4251 = vmatprep.subr.bf16.mxu1 %v4625_v59  ;;  %v4639_v59 = vld [vmem:[%s5480_s7 + $0x4] ss:$16 sps:$4 sm:$0xff]  }
 0x18b   :  { %4230 = vmatpush3.bf16.msra.mxu0 %v4610_v50 }
 0x18c   :  { %4231 = vmatprep.subr.bf16.mxu0 %v4611_v38  ;;  %4252 = vmatpush3.bf16.msra.mxu1 %v4626_v61 }
 0x18d   :  { %4253 = vmatprep.subr.bf16.mxu1 %v4627_v63 }
 0x18f   :  { %4232 = vmatpush3.bf16.msra.mxu0 %v4612_v41 }
 0x190   :  { %4233 = vmatprep.subr.bf16.mxu0 %v4613_v51  ;;  %4254 = vmatpush3.bf16.msra.mxu1 %v4628_v1  ;;  %v3990_v1 = vld [vmem:[%s5479_s6] ss:$0 sm:$0xff]  ;;  %s5036_s6 = smov 112  }
 0x191   :  { %4255 = vmatprep.subr.bf16.mxu1 %v4629_v3 }
 0x193   :  { %4234 = vmatpush3.bf16.msra.mxu0 %v4614_v52 }
 0x194   :  { %4235 = vmatprep.subr.bf16.mxu0 %v4615_v56  ;;  %4256 = vmatpush3.bf16.msra.mxu1 %v4630_v4 }
 0x195   :  { %4257 = vmatprep.subr.bf16.mxu1 %v4631_v6 }
 0x197   :  { %4236 = vmatpush3.bf16.msra.mxu0 %v4616_v58  ;;  %v4637_v58 = vld [vmem:[%s5480_s7] ss:$16 sps:$4 sm:$0xff]  }
 0x198   :  { %4237 = vmatprep.subr.bf16.mxu0 %v4617_v60  ;;  %4258 = vmatpush3.bf16.msra.mxu1 %v4632_v9 }
 0x199   :  { %4259 = vmatprep.subr.bf16.mxu1 %v4633_v12 }
 0x19b   :  { %4238 = vmatpush3.bf16.msra.mxu0 %v4618_v62 }
 0x19c   :  { %4239 = vmatprep.subr.bf16.mxu0 %v4619_v0  ;;  %4260 = vmatpush3.bf16.msra.mxu1 %v4634_v13 }
 0x19d   :  { %4261 = vmatprep.subr.bf16.mxu1 %v4635_v14 }
 0x19f   :  { %4240 = vmatpush3.bf16.msra.mxu0 %v4620_v2 }
 0x1a0   :  { %4262 = vmatpush3.bf16.msra.mxu1 %v4636_v15 }
 0x1a1   :  { %2050 = vmatprep.subr.bf16.mxu1 %v4639_v59  ;;  %v4660_v59 = vld [vmem:[#allocation6 + $0x2c4] ss:$16 sps:$4 sm:$0xff]  }
 0x202   :  { %v1450_v20 = vpop.f32.mrf.mxu0 }
 0x203   :  { %v1451_v21 = vadd.f32 %v1450_v20, %v759_v18  ;;  %v1491_v22 = vpop.f32.mrf.mxu1  ;;  %v5035_v20 = vmov 0  }
 0x204   :  { %v1452_v23 = vpop.f32.mrf.mxu0 }
 0x205   :  { %v1492_v24 = vadd.f32 %v1491_v22, %v1451_v21  ;;  %v1453_v25 = vadd.f32 %v1452_v23, %v763_v19  ;;  %v1493_v26 = vpop.f32.mrf.mxu1  ;;  %v4642_v19 = vld [vmem:[%s5480_s7 + $0xc] ss:$16 sps:$4 sm:$0xff]   ;;  %v1978_v21 = vpop.permute.xlu0 %1977 }
 0x206   :  { %v1454_v27 = vpop.f32.mrf.mxu0 }
 0x207   :  { %vm1580_vm4 = vcmp.gt.f32.partialorder %v1492_v24, 0.0  ;;  %v1584_v28 = vmul.f32 0.01, %v1492_v24  ;;  %v1494_v29 = vadd.f32 %v1493_v26, %v1453_v25  ;;  %v1495_v30 = vpop.f32.mrf.mxu1  ;;  %v4645_v25 = vld [vmem:[#allocation6 + $0xe4] ss:$16 sps:$4 sm:$0xff]  }
 0x208   :  { %v1455_v31 = vpop.f32.mrf.mxu0  ;;  %v4648_v26 = vld [vmem:[#allocation6 + $0xc4] ss:$16 sps:$4 sm:$0xff]   ;;  %2924 = vmatprep.subr.bf16.mxu0 %v4645_v25  ;;  %v4646_v27 = vld [vmem:[#allocation6 + $0xc0] ss:$16 sps:$4 sm:$0xff]  }
 0x209   :  { %vm1581_vm5 = vcmp.gt.f32.partialorder %v1494_v29, 0.0  ;;  %v1585_v32 = vmul.f32 0.01, %v1494_v29  ;;  %v1496_v33 = vpop.f32.mrf.mxu1  ;;  %v1588_v34 = vsel %vm1580_vm4, %v1492_v24, %v1584_v28  ;;  %v4643_v24 = vld [vmem:[#allocation6 + $0xe0] ss:$16 sps:$4 sm:$0xff]  }
 0x20a   :  { %v1592_v37 = vpack.c.bf16 %v1588_v34, %v1588_v34  ;;  %v4649_v30 = vld [vmem:[#allocation6 + $0xa0] ss:$16 sps:$4 sm:$0xff]   ;;  %v4657_v31 = vld [vmem:[#allocation6 + $0x84] ss:$16 sps:$4 sm:$0xff]  }
 0x20b   :  { %v1589_v35 = vsel %vm1581_vm5, %v1494_v29, %v1585_v32  ;;  %v4651_v29 = vld [vmem:[#allocation6 + $0xa4] ss:$16 sps:$4 sm:$0xff]   ;;  %v4655_v32 = vld [vmem:[#allocation6 + $0x80] ss:$16 sps:$4 sm:$0xff]  }
 0x20c   :  { %v1593_v36 = vpack.c.bf16 %v1589_v35, %v1589_v35  ;;  %v4663_v33 = vld [vmem:[#allocation6 + $0x64] ss:$16 sps:$4 sm:$0xff]   ;;  %v4661_v34 = vld [vmem:[#allocation6 + $0x60] ss:$16 sps:$4 sm:$0xff]  }
 0x20d   :  { %v4669_v35 = vld [vmem:[#allocation6 + $0x44] ss:$16 sps:$4 sm:$0xff]   ;;  %v4721_v25 = vld [vmem:[#allocation6 + $0x120] ss:$16 sps:$4 sm:$0xff]  }
 0x20e   :  { %1891 = vmatprep.mubr.bf16.mxu0 %v1593_v36  ;;  %v4667_v36 = vld [vmem:[#allocation6 + $0x40] ss:$16 sps:$4 sm:$0xff]  }
 0x20f   :  { %1892 = vmatmul.mubr.bf16.vlgmr.msra.gmra.mxu0 %v1592_v37  ;;  %v4675_v37 = vld [vmem:[#allocation6 + $0x24] ss:$16 sps:$4 sm:$0xff]  }
 0x210   :  { %2925 = vmatpush1.bf16.msra.mxu0 %v4643_v24  ;;  %v4726_v24 = vld [vmem:[#allocation6 + $0x364] ss:$16 sps:$4 sm:$0xff]  }
 0x211   :  { %2926 = vmatprep.subr.bf16.mxu0 %v4648_v26  ;;  %v4724_v26 = vld [vmem:[#allocation6 + $0x360] ss:$16 sps:$4 sm:$0xff]  }
 0x214   :  { %2927 = vmatpush1.bf16.msra.mxu0 %v4646_v27  ;;  %v4729_v27 = vld [vmem:[#allocation6 + $0x104] ss:$16 sps:$4 sm:$0xff]  }
 0x215   :  { %2928 = vmatprep.subr.bf16.mxu0 %v4651_v29  ;;  %v4727_v29 = vld [vmem:[#allocation6 + $0x100] ss:$16 sps:$4 sm:$0xff]  }
 0x218   :  { %2929 = vmatpush1.bf16.msra.mxu0 %v4649_v30  ;;  %v4730_v30 = vld [vmem:[#allocation6 + $0x340] ss:$16 sps:$4 sm:$0xff]  }
 0x219   :  { %2930 = vmatprep.subr.bf16.mxu0 %v4657_v31  ;;  %v4735_v31 = vld [vmem:[#allocation6 + $0x324] ss:$16 sps:$4 sm:$0xff]  }
 0x21c   :  { %2931 = vmatpush1.bf16.msra.mxu0 %v4655_v32  ;;  %v4738_v32 = vld [vmem:[#allocation6 + $0xec] ss:$16 sps:$4 sm:$0xff]  }
 0x21d   :  { %2932 = vmatprep.subr.bf16.mxu0 %v4663_v33  ;;  %v4733_v33 = vld [vmem:[#allocation6 + $0x320] ss:$16 sps:$4 sm:$0xff]  }
 0x220   :  { %2933 = vmatpush1.bf16.msra.mxu0 %v4661_v34  ;;  %v4741_v34 = vld [vmem:[#allocation6 + $0x304] ss:$16 sps:$4 sm:$0xff]  }
 0x221   :  { %2934 = vmatprep.subr.bf16.mxu0 %v4669_v35  ;;  %v4739_v35 = vld [vmem:[#allocation6 + $0x300] ss:$16 sps:$4 sm:$0xff]  }
 0x224   :  { %2935 = vmatpush1.bf16.msra.mxu0 %v4667_v36  ;;  %v4750_v36 = vld [vmem:[#allocation6 + $0x2ec] ss:$16 sps:$4 sm:$0xff]  }
 0x225   :  { %2936 = vmatprep.subr.bf16.mxu0 %v4675_v37  ;;  %v1991_v37 = vld [vmem:[%s5481_s8] sm:$0xf] }
 0x242   :  { %v1532_v42 = vpop.f32.mrf.mxu0 }
 0x243   :  { %v1533_v43 = vadd.f32 %v1532_v42, %v767_v39  ;;  %v1573_v44 = vpop.f32.mrf.mxu1  ;;  %v4673_v39 = vld [vmem:[#allocation6 + $0x20] ss:$16 sps:$4 sm:$0xff]  }
 0x244   :  { %v1534_v45 = vpop.f32.mrf.mxu0  ;;  %2937 = vmatpush1.bf16.msra.mxu0 %v4673_v39  ;;  %v4679_v42 = vld [vmem:[#allocation6] ss:$16 sps:$4 sm:$0xff]   ;;  %v1996_v39 = vrot.slane %v1991_v37, %v5152_v7 }
 0x245   :  { %v1574_v46 = vadd.f32 %v1573_v44, %v1533_v43  ;;  %v1535_v47 = vadd.f32 %v1534_v45, %v771_v40  ;;  %v1575_v48 = vpop.f32.mrf.mxu1  ;;  %v4681_v40 = vld [vmem:[#allocation6 + $0x4] ss:$16 sps:$4 sm:$0xff]   ;;  %v4685_v44 = vld [vmem:[#allocation6 + $0x1e0] ss:$16 sps:$4 sm:$0xff]  }
 0x246   :  { %v1536_v49 = vpop.f32.mrf.mxu0  ;;  %2938 = vmatprep.subr.bf16.mxu0 %v4681_v40  ;;  %v4687_v43 = vld [vmem:[#allocation6 + $0x1e4] ss:$16 sps:$4 sm:$0xff]   ;;  %v2000_v40 = vrot.slane %v1991_v37, %v5159_v10 }
 0x247   :  { %vm1582_vm6 = vcmp.gt.f32.partialorder %v1574_v46, 0.0  ;;  %v1586_v50 = vmul.f32 0.01, %v1574_v46  ;;  %v1576_v38 = vadd.f32 %v1575_v48, %v1535_v47  ;;  %v1577_v41 = vpop.f32.mrf.mxu1  ;;  %v4693_v45 = vld [vmem:[#allocation6 + $0x1c4] ss:$16 sps:$4 sm:$0xff]  }
 0x248   :  { %v1537_v51 = vpop.f32.mrf.mxu0  ;;  %2939 = vmatpush1.bf16.msra.mxu0 %v4679_v42  ;;  %v4699_v47 = vld [vmem:[#allocation6 + $0x1a4] ss:$16 sps:$4 sm:$0xff]   ;;  %v4697_v48 = vld [vmem:[#allocation6 + $0x1a0] ss:$16 sps:$4 sm:$0xff]  }
 0x249   :  { %vm1583_vm7 = vcmp.gt.f32.partialorder %v1576_v38, 0.0  ;;  %v1587_v52 = vmul.f32 0.01, %v1576_v38  ;;  %v1578_v53 = vpop.f32.mrf.mxu1  ;;  %v1590_v54 = vsel %vm1582_vm6, %v1574_v46, %v1586_v50  ;;  %2940 = vmatprep.subr.bf16.mxu0 %v4687_v43  ;;  %v4691_v46 = vld [vmem:[#allocation6 + $0x1c0] ss:$16 sps:$4 sm:$0xff]  }
 0x24a   :  { %v1594_v57 = vpack.c.bf16 %v1590_v54, %v1590_v54  ;;  %v4705_v49 = vld [vmem:[#allocation6 + $0x184] ss:$16 sps:$4 sm:$0xff]   ;;  %v4703_v50 = vld [vmem:[#allocation6 + $0x180] ss:$16 sps:$4 sm:$0xff]  }
 0x24b   :  { %v1591_v55 = vsel %vm1583_vm7, %v1576_v38, %v1587_v52  ;;  %v4711_v38 = vld [vmem:[#allocation6 + $0x164] ss:$16 sps:$4 sm:$0xff]   ;;  %v4709_v41 = vld [vmem:[#allocation6 + $0x160] ss:$16 sps:$4 sm:$0xff]  }
 0x24c   :  { %v1595_v56 = vpack.c.bf16 %v1591_v55, %v1591_v55  ;;  %2941 = vmatpush2.bf16.msra.mxu0 %v4685_v44  ;;  %v4717_v51 = vld [vmem:[#allocation6 + $0x144] ss:$16 sps:$4 sm:$0xff]   ;;  %v4715_v52 = vld [vmem:[#allocation6 + $0x140] ss:$16 sps:$4 sm:$0xff]   ;;  %v4640_v55 = vld [vmem:[%s5480_s7 + $0x8] ss:$16 sps:$4 sm:$0xff]  }
 0x24d   :  { %2942 = vmatprep.subr.bf16.mxu0 %v4693_v45 }
 0x24e   :  { %1931 = vmatprep.mubr.bf16.mxu1 %v1595_v56 }
 0x24f   :  { %1932 = vmatmul.mubr.bf16.vlgmr.msra.gmra.mxu1 %v1594_v57  ;;  %v4654_v57 = vld [vmem:[#allocation6 + $0x2e4] ss:$16 sps:$4 sm:$0xff]  }
 0x250   :  { %2051 = vmatpush1.bf16.msra.mxu1 %v4637_v58  ;;  %2068 = vmatprep.mubr.bf16.mxu1 %v5035_v20  ;;  %v4652_v58 = vld [vmem:[#allocation6 + $0x2e0] ss:$16 sps:$4 sm:$0xff]  }
 0x251   :  { %2091 = vmatprep.subr.bf16.mxu1 %v4642_v19  ;;  %2943 = vmatpush2.bf16.msra.mxu0 %v4691_v46  ;;  %v4714_v19 = vld [vmem:[#allocation6 + $0x3a4] ss:$16 sps:$4 sm:$0xff]  }
 0x252   :  { %2944 = vmatprep.subr.bf16.mxu0 %v4699_v47 }
 0x255   :  { %2945 = vmatpush2.bf16.msra.mxu0 %v4697_v48 }
 0x256   :  { %2946 = vmatprep.subr.bf16.mxu0 %v4705_v49  ;;  %v2004_v49 = vrot.slane %v1991_v37, %v5154_v8 }
 0x259   :  { %2947 = vmatpush2.bf16.msra.mxu0 %v4703_v50 }
 0x25a   :  { %2948 = vmatprep.subr.bf16.mxu0 %v4711_v38 }
 0x25d   :  { %2949 = vmatpush2.bf16.msra.mxu0 %v4709_v41  ;;  %v2008_v41 = vrot.slane %v1991_v37, %v5161_v11  ;;  %v4784_v37 = vld [vmem:[#allocation6 + $0x228] ss:$16 sps:$4 sm:$0xff]  }
 0x25e   :  { %2950 = vmatprep.subr.bf16.mxu0 %v4717_v51 }
 0x261   :  { %2951 = vmatpush2.bf16.msra.mxu0 %v4715_v52 }
 0x2cf   :  { %v4241_v60 = vpop.f32.mrf.mxu0 }
 0x2d1   :  { %v4242_v61 = vpop.f32.mrf.mxu0 }
 0x2d2   :  { %v4243_v0 = vadd.f32 %v4242_v61, %v4241_v60  ;;  %v4658_v60 = vld [vmem:[#allocation6 + $0x2c0] ss:$16 sps:$4 sm:$0xff]   ;;  %v4666_v61 = vld [vmem:[#allocation6 + $0x2a4] ss:$16 sps:$4 sm:$0xff]  }
 0x2d3   :  { %v4244_v62 = vpop.f32.mrf.mxu0 }
 0x2d4   :  { %v1894_v4 = vadd.f32 %v4243_v0, %v3990_v1  ;;  %v4664_v62 = vld [vmem:[#allocation6 + $0x2a0] ss:$16 sps:$4 sm:$0xff]   ;;  %v4678_v1 = vld [vmem:[#allocation6 + $0x264] ss:$16 sps:$4 sm:$0xff]  }
 0x2d5   :  { %v4245_v63 = vpop.f32.mrf.mxu0  ;;  %v4670_v0 = vld [vmem:[#allocation6 + $0x280] ss:$16 sps:$4 sm:$0xff]  }
 0x2d6   :  { %v4672_v63 = vld [vmem:[#allocation6 + $0x284] ss:$16 sps:$4 sm:$0xff]  }
 0x30f   :  { %v4263_v2 = vpop.f32.mrf.mxu1 }
 0x311   :  { %v4264_v3 = vpop.f32.mrf.mxu1 }
 0x312   :  { %v4265_v6 = vadd.f32 %v4264_v3, %v4263_v2  ;;  %v4676_v2 = vld [vmem:[#allocation6 + $0x260] ss:$16 sps:$4 sm:$0xff]   ;;  %v4684_v3 = vld [vmem:[#allocation6 + $0x244] ss:$16 sps:$4 sm:$0xff]  }
 0x313   :  { %v4266_v9 = vpop.f32.mrf.mxu1 }
 0x314   :  { %v1934_v12 = vadd.f32 %v4265_v6, %v1894_v4  ;;  %v4682_v4 = vld [vmem:[#allocation6 + $0x240] ss:$16 sps:$4 sm:$0xff]   ;;  %v4690_v6 = vld [vmem:[#allocation6 + $0x224] ss:$16 sps:$4 sm:$0xff]  }
 0x315   :  { %v4267_v13 = vpop.f32.mrf.mxu1  ;;  %v4688_v9 = vld [vmem:[#allocation6 + $0x220] ss:$16 sps:$4 sm:$0xff]  }
 0x316   :  { %vm1939_vm8 = vcmp.gt.f32.partialorder %v1934_v12, 0.0  ;;  %v1940_v14 = vmul.f32 0.01, %v1934_v12  ;;  %v4694_v13 = vld [vmem:[#allocation6 + $0x200] ss:$16 sps:$4 sm:$0xff]  }
 0x318   :  { %v5291_v15 = vsel %vm1939_vm8, %v1934_v12, %v1940_v14  ;;  %v4696_v12 = vld [vmem:[#allocation6 + $0x204] ss:$16 sps:$4 sm:$0xff]  }
 0x319   :  { %v1968_v16 = vmul.f32 0.5, %v5291_v15  ;;  %v1948_v18 = vmul.f32 1.442695, %v5291_v15  ;;  %v4702_v14 = vld [vmem:[#allocation6 + $0x3e4] ss:$16 sps:$4 sm:$0xff]  }
 0x31b   :  { %v1969_v17 = vmul.f32 1.442695, %v1968_v16  ;;  %v4700_v16 = vld [vmem:[#allocation6 + $0x3e0] ss:$16 sps:$4 sm:$0xff]  }
 0x31d   :  { %4931 = vpow2.f32 %v1969_v17  ;;  %v4708_v17 = vld [vmem:[#allocation6 + $0x3c4] ss:$16 sps:$4 sm:$0xff]  }
 0x31e   :  { %4933 = vpow2.f32 %v1948_v18  ;;  %v4706_v18 = vld [vmem:[#allocation6 + $0x3c0] ss:$16 sps:$4 sm:$0xff]  }
 0x32a   :  { %v4932_v22 = vpop.eup %4931 }
 0x32b   :  { %v1980_v23 = vmul.f32 %v4932_v22, %v1978_v21  ;;  %v4934_v28 = vpop.eup %4933  ;;  %v4720_v21 = vld [vmem:[#allocation6 + $0x384] ss:$16 sps:$4 sm:$0xff]   ;;  %v4718_v22 = vld [vmem:[#allocation6 + $0x380] ss:$16 sps:$4 sm:$0xff]  }
 0x32d   :  { %1982 = vrot.lane.b32.xlu0 %v1980_v23, %s5036_s6  ;;  %v4723_v23 = vld [vmem:[#allocation6 + $0x124] ss:$16 sps:$4 sm:$0xff]  }
 0x32e   :  { %2952 = vmatprep.subr.bf16.mxu0 %v4723_v23  ;;  %v4768_v23 = vld [vmem:[#allocation6 + $0x28c] ss:$16 sps:$4 sm:$0xff]  }
 0x32f   :  { %2953 = vmatpush2.bf16.msra.mxu0 %v4721_v25  ;;  %v4766_v25 = vld [vmem:[#allocation6 + $0x288] ss:$16 sps:$4 sm:$0xff]  }
 0x330   :  { %2954 = vmatprep.subr.bf16.mxu0 %v4729_v27  ;;  %v4774_v27 = vld [vmem:[#allocation6 + $0x26c] ss:$16 sps:$4 sm:$0xff]  }
 0x331   :  { %1951 = vrot.lane.b32.xlu0 %v4934_v28, %s5036_s6  ;;  %v4732_v28 = vld [vmem:[#allocation6 + $0x344] ss:$16 sps:$4 sm:$0xff]  }
 0x333   :  { %2955 = vmatpush2.bf16.msra.mxu0 %v4727_v29  ;;  %v4772_v29 = vld [vmem:[#allocation6 + $0x268] ss:$16 sps:$4 sm:$0xff]  }
 0x334   :  { %3006 = vmatprep.subr.bf16.mxu0 %v4738_v32  ;;  %v4775_v32 = vld [vmem:[#allocation6 + $0x8] ss:$16 sps:$4 sm:$0xff]  }
 0x39f   :  { %v1983_v53 = vpop.permute.xlu0 %1982 }
 0x3a0   :  { %v1985_v54 = vadd.f32 %v1983_v53, %v5291_v15 }
 0x3a2   :  { %v1986_v56 = vpack.c.bf16 %v1985_v54, %v1985_v54  ;;  %v4736_v54 = vld [vmem:[#allocation6 + $0xe8] ss:$16 sps:$4 sm:$0xff]  }
 0x3a4   :  { %4029 = vmatmul.mubr.msk.bf16.vlgmr.msra.gmra.mxu1 %vm1956_vm9, %v1986_v56 }
 0x3a5   :  { %2092 = vmatpush1.bf16.msra.mxu1 %v4640_v55  ;;  %2109 = vmatprep.mubr.bf16.mxu1 %v5035_v20  ;;  %v4712_v20 = vld [vmem:[#allocation6 + $0x3a0] ss:$16 sps:$4 sm:$0xff]  }
 0x3a6   :  { %2965 = vmatprep.subr.bf16.mxu1 %v4654_v57  ;;  %v4744_v57 = vld [vmem:[#allocation6 + $0xcc] ss:$16 sps:$4 sm:$0xff]  }
 0x3ac   :  { %4030 = vmatmul.mubr.msk.bf16.vlgmr.msra.gmra.mxu1 %vm1956_vm9, %v1986_v56 }
 0x3ad   :  { %2966 = vmatpush1.bf16.msra.mxu1 %v4652_v58 }
 0x3ae   :  { %2967 = vmatprep.subr.bf16.mxu1 %v4660_v59 }
 0x3b1   :  { %2968 = vmatpush1.bf16.msra.mxu1 %v4658_v60 }
 0x3b2   :  { %2969 = vmatprep.subr.bf16.mxu1 %v4666_v61 }
 0x3b5   :  { %2970 = vmatpush1.bf16.msra.mxu1 %v4664_v62  ;;  %v4742_v62 = vld [vmem:[#allocation6 + $0xc8] ss:$16 sps:$4 sm:$0xff]  }
 0x3b6   :  { %2971 = vmatprep.subr.bf16.mxu1 %v4672_v63 }
 0x3b9   :  { %2972 = vmatpush1.bf16.msra.mxu1 %v4670_v0  ;;  %v4747_v0 = vld [vmem:[#allocation6 + $0xac] ss:$16 sps:$4 sm:$0xff]  }
 0x3ba   :  { %2973 = vmatprep.subr.bf16.mxu1 %v4678_v1 }
 0x3bd   :  { %2974 = vmatpush1.bf16.msra.mxu1 %v4676_v2 }
 0x3be   :  { %2975 = vmatprep.subr.bf16.mxu1 %v4684_v3 }
 0x3c1   :  { %2976 = vmatpush1.bf16.msra.mxu1 %v4682_v4 }
 0x3c2   :  { %2977 = vmatprep.subr.bf16.mxu1 %v4690_v6  ;;  %v4745_v6 = vld [vmem:[#allocation6 + $0xa8] ss:$16 sps:$4 sm:$0xff]  }
 0x3c5   :  { %2978 = vmatpush1.bf16.msra.mxu1 %v4688_v9  ;;  %v4748_v9 = vld [vmem:[#allocation6 + $0x2e8] ss:$16 sps:$4 sm:$0xff]  }
 0x3c6   :  { %2979 = vmatprep.subr.bf16.mxu1 %v4696_v12 }
 0x3c9   :  { %2980 = vmatpush1.bf16.msra.mxu1 %v4694_v13  ;;  %v4753_v13 = vld [vmem:[#allocation6 + $0x8c] ss:$16 sps:$4 sm:$0xff]  }
 0x3ca   :  { %2981 = vmatprep.subr.bf16.mxu1 %v4702_v14  ;;  %v4756_v14 = vld [vmem:[#allocation6 + $0x2cc] ss:$16 sps:$4 sm:$0xff]  }
 0x3cd   :  { %2982 = vmatpush2.bf16.msra.mxu1 %v4700_v16  ;;  %v4751_v16 = vld [vmem:[#allocation6 + $0x88] ss:$16 sps:$4 sm:$0xff]  }
 0x3ce   :  { %2983 = vmatprep.subr.bf16.mxu1 %v4708_v17  ;;  %v4754_v17 = vld [vmem:[#allocation6 + $0x2c8] ss:$16 sps:$4 sm:$0xff]  }
 0x3d1   :  { %2984 = vmatpush2.bf16.msra.mxu1 %v4706_v18  ;;  %v4759_v18 = vld [vmem:[#allocation6 + $0x6c] ss:$16 sps:$4 sm:$0xff]  }
 0x3d2   :  { %2985 = vmatprep.subr.bf16.mxu1 %v4714_v19  ;;  %v4762_v19 = vld [vmem:[#allocation6 + $0x2ac] ss:$16 sps:$4 sm:$0xff]  }
 0x3d5   :  { %2986 = vmatpush2.bf16.msra.mxu1 %v4712_v20  ;;  %v4757_v20 = vld [vmem:[#allocation6 + $0x68] ss:$16 sps:$4 sm:$0xff]  }
 0x3d6   :  { %2987 = vmatprep.subr.bf16.mxu1 %v4720_v21  ;;  %v4760_v21 = vld [vmem:[#allocation6 + $0x2a8] ss:$16 sps:$4 sm:$0xff]  }
 0x3d9   :  { %2988 = vmatpush2.bf16.msra.mxu1 %v4718_v22  ;;  %v4765_v22 = vld [vmem:[#allocation6 + $0x4c] ss:$16 sps:$4 sm:$0xff]  }
 0x3da   :  { %2989 = vmatprep.subr.bf16.mxu1 %v4726_v24  ;;  %v4763_v24 = vld [vmem:[#allocation6 + $0x48] ss:$16 sps:$4 sm:$0xff]  }
 0x3dd   :  { %2990 = vmatpush2.bf16.msra.mxu1 %v4724_v26  ;;  %v4771_v26 = vld [vmem:[#allocation6 + $0x2c] ss:$16 sps:$4 sm:$0xff]  }
 0x3de   :  { %2991 = vmatprep.subr.bf16.mxu1 %v4732_v28  ;;  %v4769_v28 = vld [vmem:[#allocation6 + $0x28] ss:$16 sps:$4 sm:$0xff]  }
 0x3e1   :  { %2992 = vmatpush2.bf16.msra.mxu1 %v4730_v30  ;;  %v4777_v30 = vld [vmem:[#allocation6 + $0xc] ss:$16 sps:$4 sm:$0xff]  }
 0x3e2   :  { %2993 = vmatprep.subr.bf16.mxu1 %v4735_v31  ;;  %v4780_v31 = vld [vmem:[#allocation6 + $0x24c] ss:$16 sps:$4 sm:$0xff]  }
 0x3e5   :  { %2994 = vmatpush2.bf16.msra.mxu1 %v4733_v33  ;;  %v4778_v33 = vld [vmem:[#allocation6 + $0x248] ss:$16 sps:$4 sm:$0xff]  }
 0x3e6   :  { %2995 = vmatprep.subr.bf16.mxu1 %v4741_v34  ;;  %v4783_v34 = vld [vmem:[#allocation6 + $0x1ec] ss:$16 sps:$4 sm:$0xff]  }
 0x3e9   :  { %2996 = vmatpush2.bf16.msra.mxu1 %v4739_v35  ;;  %v4786_v35 = vld [vmem:[#allocation6 + $0x22c] ss:$16 sps:$4 sm:$0xff]  }
 0x3ea   :  { %3047 = vmatprep.subr.bf16.mxu1 %v4750_v36  ;;  %v4781_v36 = vld [vmem:[#allocation6 + $0x1e8] ss:$16 sps:$4 sm:$0xff]  }
 0x464   :  { %v2070_v42 = vpop.f32.mrf.mxu1 }
 0x465   :  { %v2071_v43 = vadd.f32 %v2070_v42, %v1996_v39  ;;  %v4789_v39 = vld [vmem:[#allocation6 + $0x1cc] ss:$16 sps:$4 sm:$0xff]   ;;  %v4787_v42 = vld [vmem:[#allocation6 + $0x1c8] ss:$16 sps:$4 sm:$0xff]  }
 0x466   :  { %v2072_v44 = vpop.f32.mrf.mxu1 }
 0x467   :  { %vm2118_vm10 = vcmp.gt.f32.partialorder %v2071_v43, 0.0  ;;  %v2122_v45 = vmul.f32 0.01, %v2071_v43  ;;  %v2073_v46 = vadd.f32 %v2072_v44, %v2000_v40  ;;  %v4792_v40 = vld [vmem:[#allocation6 + $0x20c] ss:$16 sps:$4 sm:$0xff]  }
 0x468   :  { %v2074_v47 = vpop.f32.mrf.mxu1  ;;  %v4795_v44 = vld [vmem:[#allocation6 + $0x1ac] ss:$16 sps:$4 sm:$0xff]  }
 0x469   :  { %vm2119_vm11 = vcmp.gt.f32.partialorder %v2073_v46, 0.0  ;;  %v2123_v48 = vmul.f32 0.01, %v2073_v46  ;;  %v2126_v50 = vsel %vm2118_vm10, %v2071_v43, %v2122_v45  ;;  %v4790_v43 = vld [vmem:[#allocation6 + $0x208] ss:$16 sps:$4 sm:$0xff]  }
 0x46a   :  { %v2075_v38 = vpop.f32.mrf.mxu1  ;;  %v5315_v55 = vpack.c.bf16 %v2126_v50, %v2126_v50  ;;  %v4798_v45 = vld [vmem:[#allocation6 + $0x3ec] ss:$16 sps:$4 sm:$0xff]   ;;  %v4796_v47 = vld [vmem:[#allocation6 + $0x3e8] ss:$16 sps:$4 sm:$0xff]  }
 0x46b   :  { %v2127_v51 = vsel %vm2119_vm11, %v2073_v46, %v2123_v48  ;;  %v4793_v46 = vld [vmem:[#allocation6 + $0x1a8] ss:$16 sps:$4 sm:$0xff]   ;;  %v4801_v48 = vld [vmem:[#allocation6 + $0x18c] ss:$16 sps:$4 sm:$0xff]  }
 0x46c   :  { %v2111_v52 = vpop.f32.mrf.mxu1  ;;  %v2131_v53 = vpack.c.bf16 %v2127_v51, %v2127_v51  ;;  %v4799_v50 = vld [vmem:[#allocation6 + $0x188] ss:$16 sps:$4 sm:$0xff]   ;;  %v4810_v51 = vld [vmem:[#allocation6 + $0x3ac] ss:$16 sps:$4 sm:$0xff]  }
 0x46d   :  { %v2112_v56 = vadd.f32 %v2111_v52, %v2004_v49  ;;  %v4804_v49 = vld [vmem:[#allocation6 + $0x3cc] ss:$16 sps:$4 sm:$0xff]   ;;  %v4802_v38 = vld [vmem:[#allocation6 + $0x3c8] ss:$16 sps:$4 sm:$0xff]  }
 0x46e   :  { %v2113_v58 = vpop.f32.mrf.mxu1  ;;  %2956 = vmatprep.mubr.bf16.mxu0 %v2131_v53  ;;  %v4805_v52 = vld [vmem:[#allocation6 + $0x168] ss:$16 sps:$4 sm:$0xff]  }
 0x46f   :  { %vm2120_vm12 = vcmp.gt.f32.partialorder %v2112_v56, 0.0  ;;  %v2124_v59 = vmul.f32 0.01, %v2112_v56  ;;  %v2114_v60 = vadd.f32 %v2113_v58, %v2008_v41  ;;  %2957 = vmatmul.mubr.bf16.vlgmr.msra.gmra.mxu0 %v5315_v55  ;;  %v4807_v41 = vld [vmem:[#allocation6 + $0x16c] ss:$16 sps:$4 sm:$0xff]  }
 0x470   :  { %3007 = vmatpush1.bf16.msra.mxu0 %v4736_v54  ;;  %v2115_v61 = vpop.f32.mrf.mxu1  ;;  %3038 = vmatprep.mubr.bf16.mxu0 %v2131_v53  ;;  %v4808_v53 = vld [vmem:[#allocation6 + $0x3a8] ss:$16 sps:$4 sm:$0xff]   ;;  %v4813_v54 = vld [vmem:[#allocation6 + $0x14c] ss:$16 sps:$4 sm:$0xff]  }
 0x471   :  { %vm2121_vm13 = vcmp.gt.f32.partialorder %v2114_v60, 0.0  ;;  %v2125_v63 = vmul.f32 0.01, %v2114_v60  ;;  %3008 = vmatprep.subr.bf16.mxu0 %v4744_v57  ;;  %v2128_v1 = vsel %vm2120_vm12, %v2112_v56, %v2124_v59  ;;  %v4816_v56 = vld [vmem:[#allocation6 + $0x38c] ss:$16 sps:$4 sm:$0xff]  }
 0x472   :  { %v2116_v2 = vpop.f32.mrf.mxu1  ;;  %v5318_v12 = vpack.c.bf16 %v2128_v1, %v2128_v1  ;;  %v4811_v57 = vld [vmem:[#allocation6 + $0x148] ss:$16 sps:$4 sm:$0xff]   ;;  %v4819_v59 = vld [vmem:[#allocation6 + $0x12c] ss:$16 sps:$4 sm:$0xff]  }
 0x473   :  { %v2129_v3 = vsel %vm2121_vm13, %v2114_v60, %v2125_v63  ;;  %v4814_v58 = vld [vmem:[#allocation6 + $0x388] ss:$16 sps:$4 sm:$0xff]   ;;  %v4822_v60 = vld [vmem:[#allocation6 + $0x36c] ss:$16 sps:$4 sm:$0xff]  }
 0x474   :  { %3009 = vmatpush1.bf16.msra.mxu0 %v4742_v62  ;;  %v2133_v4 = vpack.c.bf16 %v2129_v3, %v2129_v3  ;;  %v4817_v61 = vld [vmem:[#allocation6 + $0x128] ss:$16 sps:$4 sm:$0xff]   ;;  %v4825_v63 = vld [vmem:[#allocation6 + $0x10c] ss:$16 sps:$4 sm:$0xff]  }
 0x475   :  { %3010 = vmatprep.subr.bf16.mxu0 %v4747_v0  ;;  %v4820_v62 = vld [vmem:[#allocation6 + $0x368] ss:$16 sps:$4 sm:$0xff]   ;;  %v4828_v0 = vld [vmem:[#allocation6 + $0x34c] ss:$16 sps:$4 sm:$0xff]  }
 0x476   :  { %2997 = vmatprep.mubr.bf16.mxu1 %v2133_v4  ;;  %v4823_v1 = vld [vmem:[#allocation6 + $0x108] ss:$16 sps:$4 sm:$0xff]   ;;  %v4831_v3 = vld [vmem:[#allocation6 + $0x32c] ss:$16 sps:$4 sm:$0xff]  }
 0x477   :  { %2998 = vmatmul.mubr.bf16.vlgmr.msra.gmra.mxu1 %v5318_v12  ;;  %v4826_v2 = vld [vmem:[#allocation6 + $0x348] ss:$16 sps:$4 sm:$0xff]  }
 0x478   :  { %3011 = vmatpush1.bf16.msra.mxu0 %v4745_v6  ;;  %3048 = vmatpush1.bf16.msra.mxu1 %v4748_v9  ;;  %v4829_v6 = vld [vmem:[#allocation6 + $0x328] ss:$16 sps:$4 sm:$0xff]  }
 0x479   :  { %3079 = vmatprep.mubr.bf16.mxu1 %v2133_v4  ;;  %3012 = vmatprep.subr.bf16.mxu0 %v4753_v13  ;;  %v4837_v4 = vld [vmem:[#allocation7 + $0x74] ss:$8 sps:$4 sm:$0xff]   ;;  %v4835_v9 = vld [vmem:[#allocation7 + $0x70] ss:$8 sps:$4 sm:$0xff]  }
 0x47a   :  { %3049 = vmatprep.subr.bf16.mxu1 %v4756_v14  ;;  %v4834_v13 = vld [vmem:[#allocation6 + $0x30c] ss:$16 sps:$4 sm:$0xff]  }
 0x47b   :  { %v4840_v14 = vld [vmem:[#allocation7 + $0x64] ss:$8 sps:$4 sm:$0xff]  }
 0x47c   :  { %3013 = vmatpush1.bf16.msra.mxu0 %v4751_v16  ;;  %3050 = vmatpush1.bf16.msra.mxu1 %v4754_v17  ;;  %v4832_v16 = vld [vmem:[#allocation6 + $0x308] ss:$16 sps:$4 sm:$0xff]  }
 0x47d   :  { %3014 = vmatprep.subr.bf16.mxu0 %v4759_v18  ;;  %3051 = vmatprep.subr.bf16.mxu1 %v4762_v19  ;;  %v4838_v17 = vld [vmem:[#allocation7 + $0x60] ss:$8 sps:$4 sm:$0xff]   ;;  %v4843_v18 = vld [vmem:[#allocation7 + $0x54] ss:$8 sps:$4 sm:$0xff]   ;;  %v4841_v19 = vld [vmem:[#allocation7 + $0x50] ss:$8 sps:$4 sm:$0xff]  }
 0x480   :  { %3015 = vmatpush1.bf16.msra.mxu0 %v4757_v20  ;;  %3052 = vmatpush1.bf16.msra.mxu1 %v4760_v21  ;;  %v4846_v20 = vld [vmem:[#allocation7 + $0x44] ss:$8 sps:$4 sm:$0xff]   ;;  %v4844_v21 = vld [vmem:[#allocation7 + $0x40] ss:$8 sps:$4 sm:$0xff]  }
 0x481   :  { %3016 = vmatprep.subr.bf16.mxu0 %v4765_v22  ;;  %3053 = vmatprep.subr.bf16.mxu1 %v4768_v23  ;;  %v4849_v22 = vld [vmem:[#allocation7 + $0x34] ss:$8 sps:$4 sm:$0xff]   ;;  %v4852_v23 = vld [vmem:[#allocation7 + $0x24] ss:$8 sps:$4 sm:$0xff]  }
 0x484   :  { %3017 = vmatpush1.bf16.msra.mxu0 %v4763_v24  ;;  %3054 = vmatpush1.bf16.msra.mxu1 %v4766_v25  ;;  %v4850_v24 = vld [vmem:[#allocation7 + $0x20] ss:$8 sps:$4 sm:$0xff]   ;;  %v4885_v25 = vld [vmem:[#allocation7 + $0x174] ss:$8 sps:$4 sm:$0xff]  }
 0x485   :  { %3018 = vmatprep.subr.bf16.mxu0 %v4771_v26  ;;  %3055 = vmatprep.subr.bf16.mxu1 %v4774_v27  ;;  %v4855_v26 = vld [vmem:[#allocation7 + $0x14] ss:$8 sps:$4 sm:$0xff]   ;;  %v4883_v27 = vld [vmem:[#allocation7 + $0x170] ss:$8 sps:$4 sm:$0xff]  }
 0x488   :  { %3019 = vmatpush1.bf16.msra.mxu0 %v4769_v28  ;;  %3056 = vmatpush1.bf16.msra.mxu1 %v4772_v29  ;;  %v4888_v28 = vld [vmem:[#allocation7 + $0x164] ss:$8 sps:$4 sm:$0xff]   ;;  %v4886_v29 = vld [vmem:[#allocation7 + $0x160] ss:$8 sps:$4 sm:$0xff]  }
 0x489   :  { %3020 = vmatprep.subr.bf16.mxu0 %v4777_v30  ;;  %3057 = vmatprep.subr.bf16.mxu1 %v4780_v31  ;;  %v4891_v30 = vld [vmem:[#allocation7 + $0x154] ss:$8 sps:$4 sm:$0xff]   ;;  %v4858_v31 = vld [vmem:[#allocation7 + $0x4] ss:$8 sps:$4 sm:$0xff]  }
 0x48c   :  { %3021 = vmatpush1.bf16.msra.mxu0 %v4775_v32  ;;  %3058 = vmatpush1.bf16.msra.mxu1 %v4778_v33  ;;  %v4889_v32 = vld [vmem:[#allocation7 + $0x150] ss:$8 sps:$4 sm:$0xff]   ;;  %v4856_v33 = vld [vmem:[#allocation7] ss:$8 sps:$4 sm:$0xff]  }
 0x48d   :  { %3022 = vmatprep.subr.bf16.mxu0 %v4783_v34  ;;  %3059 = vmatprep.subr.bf16.mxu1 %v4786_v35  ;;  %v4894_v34 = vld [vmem:[#allocation7 + $0x144] ss:$8 sps:$4 sm:$0xff]   ;;  %v4861_v35 = vld [vmem:[#allocation7 + $0xf4] ss:$8 sps:$4 sm:$0xff]  }
 0x490   :  { %3023 = vmatpush2.bf16.msra.mxu0 %v4781_v36  ;;  %3060 = vmatpush1.bf16.msra.mxu1 %v4784_v37  ;;  %v4892_v36 = vld [vmem:[#allocation7 + $0x140] ss:$8 sps:$4 sm:$0xff]   ;;  %v4859_v37 = vld [vmem:[#allocation7 + $0xf0] ss:$8 sps:$4 sm:$0xff]  }
 0x491   :  { %3024 = vmatprep.subr.bf16.mxu0 %v4789_v39  ;;  %3061 = vmatprep.subr.bf16.mxu1 %v4792_v40  ;;  %v4897_v39 = vld [vmem:[#allocation7 + $0x134] ss:$8 sps:$4 sm:$0xff]   ;;  %v4864_v40 = vld [vmem:[#allocation7 + $0xe4] ss:$8 sps:$4 sm:$0xff]  }
 0x494   :  { %3025 = vmatpush2.bf16.msra.mxu0 %v4787_v42  ;;  %3062 = vmatpush1.bf16.msra.mxu1 %v4790_v43  ;;  %v4895_v42 = vld [vmem:[#allocation7 + $0x130] ss:$8 sps:$4 sm:$0xff]   ;;  %v4862_v43 = vld [vmem:[#allocation7 + $0xe0] ss:$8 sps:$4 sm:$0xff]  }
 0x495   :  { %3026 = vmatprep.subr.bf16.mxu0 %v4795_v44  ;;  %3063 = vmatprep.subr.bf16.mxu1 %v4798_v45  ;;  %v4900_v44 = vld [vmem:[#allocation7 + $0x124] ss:$8 sps:$4 sm:$0xff]   ;;  %v4867_v45 = vld [vmem:[#allocation7 + $0xd4] ss:$8 sps:$4 sm:$0xff]  }
 0x498   :  { %3027 = vmatpush2.bf16.msra.mxu0 %v4793_v46  ;;  %3064 = vmatpush2.bf16.msra.mxu1 %v4796_v47  ;;  %v4898_v46 = vld [vmem:[#allocation7 + $0x120] ss:$8 sps:$4 sm:$0xff]   ;;  %v4865_v47 = vld [vmem:[#allocation7 + $0xd0] ss:$8 sps:$4 sm:$0xff]  }
 0x499   :  { %3028 = vmatprep.subr.bf16.mxu0 %v4801_v48  ;;  %3065 = vmatprep.subr.bf16.mxu1 %v4804_v49  ;;  %v4903_v48 = vld [vmem:[#allocation7 + $0x114] ss:$8 sps:$4 sm:$0xff]   ;;  %v4870_v49 = vld [vmem:[#allocation7 + $0xc4] ss:$8 sps:$4 sm:$0xff]  }
 0x49c   :  { %3029 = vmatpush2.bf16.msra.mxu0 %v4799_v50  ;;  %3066 = vmatpush2.bf16.msra.mxu1 %v4802_v38  ;;  %v4901_v50 = vld [vmem:[#allocation7 + $0x110] ss:$8 sps:$4 sm:$0xff]   ;;  %v4868_v38 = vld [vmem:[#allocation7 + $0xc0] ss:$8 sps:$4 sm:$0xff]  }
 0x49d   :  { %3030 = vmatprep.subr.bf16.mxu0 %v4807_v41  ;;  %3067 = vmatprep.subr.bf16.mxu1 %v4810_v51  ;;  %v4906_v41 = vld [vmem:[#allocation7 + $0x104] ss:$8 sps:$4 sm:$0xff]   ;;  %v4873_v51 = vld [vmem:[#allocation7 + $0xb4] ss:$8 sps:$4 sm:$0xff]  }
 0x4a0   :  { %3031 = vmatpush2.bf16.msra.mxu0 %v4805_v52  ;;  %3068 = vmatpush2.bf16.msra.mxu1 %v4808_v53  ;;  %v4904_v52 = vld [vmem:[#allocation7 + $0x100] ss:$8 sps:$4 sm:$0xff]   ;;  %v4871_v53 = vld [vmem:[#allocation7 + $0xb0] ss:$8 sps:$4 sm:$0xff]  }
 0x4a1   :  { %3032 = vmatprep.subr.bf16.mxu0 %v4813_v54  ;;  %3069 = vmatprep.subr.bf16.mxu1 %v4816_v56  ;;  %v4909_v54 = vld [vmem:[#allocation7 + $0x1f4] ss:$8 sps:$4 sm:$0xff]   ;;  %v4876_v56 = vld [vmem:[#allocation7 + $0xa4] ss:$8 sps:$4 sm:$0xff]  }
 0x4a4   :  { %3033 = vmatpush2.bf16.msra.mxu0 %v4811_v57  ;;  %3070 = vmatpush2.bf16.msra.mxu1 %v4814_v58  ;;  %v4907_v57 = vld [vmem:[#allocation7 + $0x1f0] ss:$8 sps:$4 sm:$0xff]   ;;  %v4874_v58 = vld [vmem:[#allocation7 + $0xa0] ss:$8 sps:$4 sm:$0xff]  }
 0x4a5   :  { %3034 = vmatprep.subr.bf16.mxu0 %v4819_v59  ;;  %3071 = vmatprep.subr.bf16.mxu1 %v4822_v60  ;;  %v4912_v59 = vld [vmem:[#allocation7 + $0x1e4] ss:$8 sps:$4 sm:$0xff]   ;;  %v4879_v60 = vld [vmem:[#allocation7 + $0x94] ss:$8 sps:$4 sm:$0xff]  }
 0x4a8   :  { %3035 = vmatpush2.bf16.msra.mxu0 %v4817_v61  ;;  %3072 = vmatpush2.bf16.msra.mxu1 %v4820_v62  ;;  %v4910_v61 = vld [vmem:[#allocation7 + $0x1e0] ss:$8 sps:$4 sm:$0xff]   ;;  %v4877_v62 = vld [vmem:[#allocation7 + $0x90] ss:$8 sps:$4 sm:$0xff]  }
 0x4a9   :  { %3036 = vmatprep.subr.bf16.mxu0 %v4825_v63  ;;  %3073 = vmatprep.subr.bf16.mxu1 %v4828_v0  ;;  %v4915_v63 = vld [vmem:[#allocation7 + $0x1d4] ss:$8 sps:$4 sm:$0xff]   ;;  %v4882_v0 = vld [vmem:[#allocation7 + $0x84] ss:$8 sps:$4 sm:$0xff]  }
 0x4ac   :  { %3037 = vmatpush2.bf16.msra.mxu0 %v4823_v1  ;;  %3074 = vmatpush2.bf16.msra.mxu1 %v4826_v2  ;;  %v4913_v1 = vld [vmem:[#allocation7 + $0x1d0] ss:$8 sps:$4 sm:$0xff]   ;;  %v4880_v2 = vld [vmem:[#allocation7 + $0x80] ss:$8 sps:$4 sm:$0xff]  }
 0x4ad   :  { %3075 = vmatprep.subr.bf16.mxu1 %v4831_v3  ;;  %3500 = vmatprep.subr.bf16.mxu0 %v4837_v4  ;;  %v4918_v3 = vld [vmem:[#allocation7 + $0x1c4] ss:$8 sps:$4 sm:$0xff]   ;;  %v4916_v4 = vld [vmem:[#allocation7 + $0x1c0] ss:$8 sps:$4 sm:$0xff]  }
 0x4af   :  { %3039 = vmatmul.mubr.bf16.vlgmr.msra.gmra.mxu0 %v5315_v55  ;;  %v4847_v55 = vld [vmem:[#allocation7 + $0x30] ss:$8 sps:$4 sm:$0xff]  }
 0x4b0   :  { %3076 = vmatpush2.bf16.msra.mxu1 %v4829_v6  ;;  %3501 = vmatpush1.bf16.msra.mxu0 %v4835_v9  ;;  %v4921_v6 = vld [vmem:[#allocation7 + $0x1b4] ss:$8 sps:$4 sm:$0xff]   ;;  %v4919_v9 = vld [vmem:[#allocation7 + $0x1b0] ss:$8 sps:$4 sm:$0xff]  }
 0x4b1   :  { %3077 = vmatprep.subr.bf16.mxu1 %v4834_v13  ;;  %3502 = vmatprep.subr.bf16.mxu0 %v4840_v14  ;;  %v4924_v13 = vld [vmem:[#allocation7 + $0x1a4] ss:$8 sps:$4 sm:$0xff]   ;;  %v4922_v14 = vld [vmem:[#allocation7 + $0x1a0] ss:$8 sps:$4 sm:$0xff]  }
 0x4b4   :  { %3078 = vmatpush2.bf16.msra.mxu1 %v4832_v16  ;;  %3503 = vmatpush1.bf16.msra.mxu0 %v4838_v17  ;;  %v4927_v16 = vld [vmem:[#allocation7 + $0x194] ss:$8 sps:$4 sm:$0xff]   ;;  %v4925_v17 = vld [vmem:[#allocation7 + $0x190] ss:$8 sps:$4 sm:$0xff]  }
 0x4b5   :  { %3504 = vmatprep.subr.bf16.mxu0 %v4843_v18  ;;  %3541 = vmatprep.subr.bf16.mxu1 %v4885_v25  ;;  %v4930_v18 = vld [vmem:[#allocation7 + $0x184] ss:$8 sps:$4 sm:$0xff]  }
 0x4b7   :  { %3080 = vmatmul.mubr.bf16.vlgmr.msra.gmra.mxu1 %v5318_v12  ;;  %v4853_v12 = vld [vmem:[#allocation7 + $0x10] ss:$8 sps:$4 sm:$0xff]  }
 0x4b8   :  { %3505 = vmatpush1.bf16.msra.mxu0 %v4841_v19  ;;  %3542 = vmatpush1.bf16.msra.mxu1 %v4883_v27  ;;  %v4928_v19 = vld [vmem:[#allocation7 + $0x180] ss:$8 sps:$4 sm:$0xff]  }
 0x4b9   :  { %3506 = vmatprep.subr.bf16.mxu0 %v4846_v20  ;;  %3543 = vmatprep.subr.bf16.mxu1 %v4888_v28  ;;  %v2262_v20 = vld [vmem:[%s5483_s10] sm:$0xf] }
 0x4bc   :  { %3507 = vmatpush1.bf16.msra.mxu0 %v4844_v21  ;;  %3544 = vmatpush1.bf16.msra.mxu1 %v4886_v29 }
 0x4bd   :  { %3508 = vmatprep.subr.bf16.mxu0 %v4849_v22  ;;  %3545 = vmatprep.subr.bf16.mxu1 %v4891_v30 }
 0x4c0   :  { %3509 = vmatpush1.bf16.msra.mxu0 %v4847_v55  ;;  %3546 = vmatpush1.bf16.msra.mxu1 %v4889_v32  ;;  %v2267_v55 = vrot.slane %v2262_v20, %v5152_v7 }
 0x4c1   :  { %3510 = vmatprep.subr.bf16.mxu0 %v4852_v23  ;;  %3547 = vmatprep.subr.bf16.mxu1 %v4894_v34 }
 0x4c4   :  { %3511 = vmatpush1.bf16.msra.mxu0 %v4850_v24  ;;  %3548 = vmatpush1.bf16.msra.mxu1 %v4892_v36  ;;  %v2271_v24 = vrot.slane %v2262_v20, %v5159_v10 }
 0x4c5   :  { %3512 = vmatprep.subr.bf16.mxu0 %v4855_v26  ;;  %3549 = vmatprep.subr.bf16.mxu1 %v4897_v39 }
 0x4c8   :  { %3513 = vmatpush1.bf16.msra.mxu0 %v4853_v12  ;;  %3550 = vmatpush1.bf16.msra.mxu1 %v4895_v42 }
 0x4c9   :  { %3514 = vmatprep.subr.bf16.mxu0 %v4858_v31  ;;  %3551 = vmatprep.subr.bf16.mxu1 %v4900_v44 }
 0x4cc   :  { %3515 = vmatpush1.bf16.msra.mxu0 %v4856_v33  ;;  %3552 = vmatpush1.bf16.msra.mxu1 %v4898_v46 }
 0x4cd   :  { %3516 = vmatprep.subr.bf16.mxu0 %v4861_v35  ;;  %3553 = vmatprep.subr.bf16.mxu1 %v4903_v48 }
 0x4d0   :  { %3517 = vmatpush2.bf16.msra.mxu0 %v4859_v37  ;;  %3554 = vmatpush1.bf16.msra.mxu1 %v4901_v50 }
 0x4d1   :  { %3518 = vmatprep.subr.bf16.mxu0 %v4864_v40  ;;  %3555 = vmatprep.subr.bf16.mxu1 %v4906_v41 }
 0x4d4   :  { %3519 = vmatpush2.bf16.msra.mxu0 %v4862_v43  ;;  %3556 = vmatpush1.bf16.msra.mxu1 %v4904_v52  ;;  %v2275_v43 = vrot.slane %v2262_v20, %v5154_v8 }
 0x4d5   :  { %3520 = vmatprep.subr.bf16.mxu0 %v4867_v45  ;;  %3557 = vmatprep.subr.bf16.mxu1 %v4909_v54  ;;  %v2279_v45 = vrot.slane %v2262_v20, %v5161_v11  ;;  %v3622_v11 = vld [vmem:[%s5486_s13 + $0xf8] sm:$0xff] }
 0x4d8   :  { %3521 = vmatpush2.bf16.msra.mxu0 %v4865_v47  ;;  %3558 = vmatpush2.bf16.msra.mxu1 %v4907_v57 }
 0x4d9   :  { %3522 = vmatprep.subr.bf16.mxu0 %v4870_v49  ;;  %3559 = vmatprep.subr.bf16.mxu1 %v4912_v59  ;;  %v3606_v59 = vld [vmem:[%s5486_s13 + $0x78] sm:$0xff] }
 0x4dc   :  { %3523 = vmatpush2.bf16.msra.mxu0 %v4868_v38  ;;  %3560 = vmatpush2.bf16.msra.mxu1 %v4910_v61  ;;  %v3605_v61 = vld [vmem:[%s5486_s13 + $0x70] sm:$0xff] }
 0x4dd   :  { %3524 = vmatprep.subr.bf16.mxu0 %v4873_v51  ;;  %3561 = vmatprep.subr.bf16.mxu1 %v4915_v63  ;;  %v3604_v63 = vld [vmem:[%s5486_s13 + $0x68] sm:$0xff] }
 0x4e0   :  { %3525 = vmatpush2.bf16.msra.mxu0 %v4871_v53  ;;  %3562 = vmatpush2.bf16.msra.mxu1 %v4913_v1  ;;  %v3603_v1 = vld [vmem:[%s5486_s13 + $0x60] sm:$0xff] }
 0x4e1   :  { %3526 = vmatprep.subr.bf16.mxu0 %v4876_v56  ;;  %3563 = vmatprep.subr.bf16.mxu1 %v4918_v3  ;;  %v3602_v3 = vld [vmem:[%s5486_s13 + $0x58] sm:$0xff] }
 0x4e4   :  { %3527 = vmatpush2.bf16.msra.mxu0 %v4874_v58  ;;  %3564 = vmatpush2.bf16.msra.mxu1 %v4916_v4  ;;  %v3617_v4 = vld [vmem:[%s5486_s13 + $0xd0] sm:$0xff] }
 0x4e5   :  { %3528 = vmatprep.subr.bf16.mxu0 %v4879_v60  ;;  %3565 = vmatprep.subr.bf16.mxu1 %v4921_v6  ;;  %v3621_v60 = vld [vmem:[%s5486_s13 + $0xf0] sm:$0xff] }
 0x4e6   :  { %v3601_v6 = vld [vmem:[%s5486_s13 + $0x50] sm:$0xff] }
 0x4e8   :  { %3529 = vmatpush2.bf16.msra.mxu0 %v4877_v62  ;;  %3566 = vmatpush2.bf16.msra.mxu1 %v4919_v9  ;;  %v3620_v62 = vld [vmem:[%s5486_s13 + $0xe8] sm:$0xff] }
 0x4e9   :  { %3530 = vmatprep.subr.bf16.mxu0 %v4882_v0  ;;  %3567 = vmatprep.subr.bf16.mxu1 %v4924_v13  ;;  %v3619_v0 = vld [vmem:[%s5486_s13 + $0xe0] sm:$0xff]  ;;  %v3616_v9 = vld [vmem:[%s5486_s13 + $0xc8] sm:$0xff] }
 0x4ec   :  { %3531 = vmatpush2.bf16.msra.mxu0 %v4880_v2  ;;  %3568 = vmatpush2.bf16.msra.mxu1 %v4922_v14  ;;  %v3618_v2 = vld [vmem:[%s5486_s13 + $0xd8] sm:$0xff] }
 0x4ed   :  { %3569 = vmatprep.subr.bf16.mxu1 %v4927_v16  ;;  %4269 = vmatprep.subr.mxu0 %v3622_v11  ;;  %v3706_v11 = vld [vmem:[%s5487_s14 + $0x18] sm:$0xff] }
 0x4f0   :  { %3570 = vmatpush2.bf16.msra.mxu1 %v4925_v17 }
 0x4f1   :  { %3571 = vmatprep.subr.bf16.mxu1 %v4930_v18  ;;  %v3168_v18 = vld [vmem:[%s5485_s12] sm:$0x3] }
 0x4f2   :  { %v3177_v20 = vrot.slane %v3168_v18, %v5159_v10  ;;  %v3615_v10 = vld [vmem:[%s5486_s13 + $0xc0] sm:$0xff] }
 0x4f4   :  { %3572 = vmatpush2.bf16.msra.mxu1 %v4928_v19  ;;  %v3173_v19 = vrot.slane %v3168_v18, %v5152_v7  ;;  %v3600_v7 = vld [vmem:[%s5486_s13 + $0x48] sm:$0xff] }
 0x4f5   :  { %3738 = vmatprep.subr.mxu1 %v3706_v11 }
 0x52f   :  { %v2958_v21 = vpop.f32.mrf.mxu0 }
 0x530   :  { %v2959_v26 = vadd.f32 %v2958_v21, %v2267_v55 }
 0x531   :  { %v2960_v22 = vpop.f32.mrf.mxu0 }
 0x532   :  { %v2961_v28 = vadd.f32 %v2960_v22, %v2271_v24 }
 0x533   :  { %v2962_v23 = vpop.f32.mrf.mxu0 }
 0x535   :  { %v2963_v25 = vpop.f32.mrf.mxu0 }
 0x537   :  { %v2999_v27 = vpop.f32.mrf.mxu1 }
 0x538   :  { %v3000_v29 = vadd.f32 %v2999_v27, %v2959_v26 }
 0x539   :  { %v3001_v12 = vpop.f32.mrf.mxu1 }
 0x53a   :  { %vm3088_vm14 = vcmp.gt.f32.partialorder %v3000_v29, 0.0  ;;  %v3092_v30 = vmul.f32 0.01, %v3000_v29  ;;  %v3002_v31 = vadd.f32 %v3001_v12, %v2961_v28  ;;  %v3614_v12 = vld [vmem:[%s5486_s13 + $0xb8] sm:$0xff] }
 0x53b   :  { %v3003_v32 = vpop.f32.mrf.mxu1 }
 0x53c   :  { %vm3089_vm15 = vcmp.gt.f32.partialorder %v3002_v31, 0.0  ;;  %v3093_v33 = vmul.f32 0.01, %v3002_v31  ;;  %v3096_v34 = vsel %vm3088_vm14, %v3000_v29, %v3092_v30  ;;  %v3599_v29 = vld [vmem:[%s5486_s13 + $0x40] sm:$0xff]  ;;  %v3598_v30 = vld [vmem:[%s5486_s13 + $0x38] sm:$0xff]  ;;  %v3597_v32 = vld [vmem:[%s5486_s13 + $0x30] sm:$0xff] }
 0x53d   :  { %v3004_v35 = vpop.f32.mrf.mxu1  ;;  %v3100_v39 = vpack.c.bf16 %v3096_v34, %v3096_v34  ;;  %v3596_v34 = vld [vmem:[%s5486_s13 + $0x28] sm:$0xff] }
 0x53e   :  { %v3097_v36 = vsel %vm3089_vm15, %v3002_v31, %v3093_v33  ;;  %v3613_v31 = vld [vmem:[%s5486_s13 + $0xb0] sm:$0xff]  ;;  %v3612_v33 = vld [vmem:[%s5486_s13 + $0xa8] sm:$0xff]  ;;  %v3611_v35 = vld [vmem:[%s5486_s13 + $0xa0] sm:$0xff] }
 0x53f   :  { %v3101_v37 = vpack.c.bf16 %v3097_v36, %v3097_v36  ;;  %v3595_v36 = vld [vmem:[%s5486_s13 + $0x20] sm:$0xff] }
 0x541   :  { %3532 = vmatprep.mubr.bf16.mxu0 %v3101_v37  ;;  %v3610_v37 = vld [vmem:[%s5486_s13 + $0x98] sm:$0xff] }
 0x542   :  { %3533 = vmatmul.mubr.bf16.vlgmr.msra.gmra.mxu0 %v3100_v39  ;;  %v3594_v39 = vld [vmem:[%s5486_s13 + $0x18] sm:$0xff] }
 0x543   :  { %4270 = vmatpush3.msra.mxu0 %v3606_v59  ;;  %v3705_v59 = vld [vmem:[%s5487_s14 + $0x10] sm:$0xff] }
 0x544   :  { %4271 = vmatprep.subr.mxu0 %v3621_v60  ;;  %v3704_v60 = vld [vmem:[%s5487_s14 + $0x8] sm:$0xff] }
 0x545   :  { %4272 = vmatpush3.msra.mxu0 %v3605_v61  ;;  %v3703_v61 = vld [vmem:[%s5487_s14] sm:$0xff] }
 0x546   :  { %4273 = vmatprep.subr.mxu0 %v3620_v62  ;;  %v5037_v62 = vmov 0.0  }
 0x547   :  { %4274 = vmatpush3.msra.mxu0 %v3604_v63  ;;  %v1962_v63 = vand.u32 127, %v181_v5 }
 0x548   :  { %4275 = vmatprep.subr.mxu0 %v3619_v0 }
 0x549   :  { %4276 = vmatpush3.msra.mxu0 %v3603_v1  ;;  %vm1963_vm2 = vcmp.eq.s32.totalorder %v1962_v63, 32 }
 0x54a   :  { %4277 = vmatprep.subr.mxu0 %v3618_v2 }
 0x54b   :  { %4278 = vmatpush3.msra.mxu0 %v3602_v3 }
 0x54c   :  { %4279 = vmatprep.subr.mxu0 %v3617_v4  ;;  %v4223_v4 = vld [vmem:[%s5488_s15] ss:$0 sm:$0xff] }
 0x54d   :  { %4280 = vmatpush3.msra.mxu0 %v3601_v6 }
 0x54e   :  { %4281 = vmatprep.subr.mxu0 %v3616_v9 }
 0x54f   :  { %4282 = vmatpush3.msra.mxu0 %v3600_v7 }
 0x550   :  { %4283 = vmatprep.subr.mxu0 %v3615_v10 }
 0x551   :  { %4284 = vmatpush3.msra.mxu0 %v3599_v29 }
 0x552   :  { %4285 = vmatprep.subr.mxu0 %v3614_v12 }
 0x553   :  { %4286 = vmatpush3.msra.mxu0 %v3598_v30 }
 0x554   :  { %4287 = vmatprep.subr.mxu0 %v3613_v31 }
 0x555   :  { %4288 = vmatpush3.msra.mxu0 %v3597_v32 }
 0x556   :  { %4289 = vmatprep.subr.mxu0 %v3612_v33 }
 0x557   :  { %4290 = vmatpush3.msra.mxu0 %v3596_v34 }
 0x558   :  { %4291 = vmatprep.subr.mxu0 %v3611_v35 }
 0x559   :  { %4292 = vmatpush3.msra.mxu0 %v3595_v36 }
 0x55a   :  { %4293 = vmatprep.subr.mxu0 %v3610_v37 }
 0x55b   :  { %4294 = vmatpush3.msra.mxu0 %v3594_v39 }
 0x56f   :  { %v3040_v40 = vpop.f32.mrf.mxu0 }
 0x570   :  { %v3041_v47 = vadd.f32 %v3040_v40, %v2275_v43  ;;  %v3609_v40 = vld [vmem:[%s5486_s13 + $0x90] sm:$0xff]  ;;  %v3608_v43 = vld [vmem:[%s5486_s13 + $0x88] sm:$0xff] }
 0x571   :  { %v3042_v42 = vpop.f32.mrf.mxu0  ;;  %4295 = vmatprep.subr.mxu0 %v3609_v40 }
 0x572   :  { %v3043_v49 = vadd.f32 %v3042_v42, %v2279_v45  ;;  %v3593_v42 = vld [vmem:[%s5486_s13 + $0x10] sm:$0xff]  ;;  %v3607_v45 = vld [vmem:[%s5486_s13 + $0x80] sm:$0xff] }
 0x573   :  { %v3044_v44 = vpop.f32.mrf.mxu0  ;;  %4296 = vmatpush3.msra.mxu0 %v3593_v42 }
 0x574   :  { %v3592_v44 = vld [vmem:[%s5486_s13 + $0x8] sm:$0xff]  ;;  %4297 = vmatprep.subr.mxu0 %v3608_v43 }
 0x575   :  { %v3045_v46 = vpop.f32.mrf.mxu0  ;;  %4298 = vmatpush3.msra.mxu0 %v3592_v44 }
 0x576   :  { %v3591_v46 = vld [vmem:[%s5486_s13] sm:$0xff]  ;;  %4299 = vmatprep.subr.mxu0 %v3607_v45 }
 0x577   :  { %v3081_v48 = vpop.f32.mrf.mxu1  ;;  %4300 = vmatpush3.msra.mxu0 %v3591_v46 }
 0x578   :  { %v3082_v50 = vadd.f32 %v3081_v48, %v3041_v47 }
 0x579   :  { %v3083_v38 = vpop.f32.mrf.mxu1 }
 0x57a   :  { %vm3090_vm0 = vcmp.gt.f32.partialorder %v3082_v50, 0.0  ;;  %v3094_v41 = vmul.f32 0.01, %v3082_v50  ;;  %v3084_v51 = vadd.f32 %v3083_v38, %v3043_v49 }
 0x57b   :  { %v3085_v52 = vpop.f32.mrf.mxu1 }
 0x57c   :  { %vm3091_vm1 = vcmp.gt.f32.partialorder %v3084_v51, 0.0  ;;  %v3095_v53 = vmul.f32 0.01, %v3084_v51  ;;  %v3098_v54 = vsel %vm3090_vm0, %v3082_v50, %v3094_v41  ;;  %v1942_v41 = vmul.f32 %v5291_v15, %v5291_v15 }
 0x57d   :  { %v3086_v56 = vpop.f32.mrf.mxu1  ;;  %v3102_v8 = vpack.c.bf16 %v3098_v54, %v3098_v54 }
 0x57e   :  { %v3099_v57 = vsel %vm3091_vm1, %v3084_v51, %v3095_v53  ;;  %v1952_v53 = vpop.permute.xlu0 %1951 }
 0x57f   :  { %v3103_v58 = vpack.c.bf16 %v3099_v57, %v3099_v57 }
 0x581   :  { %3573 = vmatprep.mubr.bf16.mxu1 %v3103_v58 }
 0x582   :  { %3574 = vmatmul.mubr.bf16.vlgmr.msra.gmra.mxu1 %v3102_v8 }
 0x583   :  { %3739 = vmatpush1.msra.mxu1 %v3705_v59  ;;  %3774 = vmatprep.mubr.f32.mxu1 %v5037_v62 }
 0x584   :  { %3740 = vmatprep.subr.mxu1 %v3704_v60 }
 0x585   :  { %3741 = vmatpush1.msra.mxu1 %v3703_v61 }
 0x602   :  { %v3534_v13 = vpop.f32.mrf.mxu0 }
 0x603   :  { %v3535_v22 = vadd.f32 %v3534_v13, %v3173_v19 }
 0x604   :  { %v3536_v14 = vpop.f32.mrf.mxu0 }
 0x605   :  { %v3537_v55 = vadd.f32 %v3536_v14, %v3177_v20 }
 0x606   :  { %v3538_v16 = vpop.f32.mrf.mxu0 }
 0x608   :  { %v3539_v17 = vpop.f32.mrf.mxu0 }
 0x642   :  { %v3575_v21 = vpop.f32.mrf.mxu1 }
 0x643   :  { %v5374_v24 = vadd.f32 %v3575_v21, %v3535_v22 }
 0x644   :  { %v3577_v23 = vpop.f32.mrf.mxu1 }
 0x645   :  { %v5376_v25 = vadd.f32 %v3577_v23, %v3537_v55 }
 0x646   :  { %v3579_v26 = vpop.f32.mrf.mxu1 }
 0x647   :  { %v3582_v27 = vmax.f32 %v5374_v24, %v5376_v25 }
 0x648   :  { %v3580_v28 = vpop.f32.mrf.mxu1 }
 0x649   :  { %3583 = vmax.xlane.f32.xlu1 %v3582_v27 }
 0x65a   :  { %1944 = vrot.lane.b32.xlu1 %v5291_v15, %s5036_s6 }
 0x6d2   :  { %v3584_v47 = vpop.xlane.xlu1 %3583 }
 0x6d3   :  { %v3585_v48 = vsub.f32 %v5374_v24, %v3584_v47  ;;  %v3586_v49 = vsub.f32 %v5376_v25, %v3584_v47 }
 0x6d5   :  { %v3587_v50 = vmul.f32 1.442695, %v3585_v48  ;;  %v3589_v38 = vmul.f32 1.442695, %v3586_v49 }
 0x6d6   :  { %v1945_v51 = vpop.permute.xlu1 %1944 }
 0x6d7   :  { %4935 = vpow2.f32 %v3587_v50  ;;  %v1947_v52 = vsub.f32 %v1942_v41, %v1945_v51 }
 0x6d8   :  { %4937 = vpow2.f32 %v3589_v38 }
 0x6d9   :  { %v1954_v54 = vadd.f32 %v1952_v53, %v1947_v52 }
 0x6db   :  { %v4023_v56 = vadd.f32 -1.0, %v1954_v54 }
 0x6dd   :  { %v1957_v57 = vsel %vm1956_vm9, %v4023_v56, 0.0 }
 0x6de   :  { %1958 = vadd.xlane.f32.xlu0 %v1957_v57 }
 0x6e4   :  { %v4936_v58 = vpop.eup %4935 }
 0x6e5   :  { %v4938_v8 = vpop.eup %4937 }
 0x6e6   :  { %3694 = vmatprep.mubr.f32.mxu0 %v4938_v8 }
 0x6e7   :  { %3695 = vmatmul.mubr.f32.vlgmr.msra.gmra.mxu0 %v4936_v58 }
 0x767   :  { %v1959_v0 = vpop.xlane.xlu0 %1958 }
 0x768   :  { %v1960_v1 = vmul.f32 0.5, %v1959_v0 }
 0x76a   :  { %v1966_v2 = vsel %vm1963_vm2, %v1960_v1, %v5291_v15 }
 0x76b   :  { %1967 = vst [vmem:[%s5490_s17] sm:$0xff] %v1966_v2 }
 0x7a7   :  { %v4301_v3 = vpop.f32.mrf.mxu0 }
 0x7a9   :  { %v4302_v6 = vpop.f32.mrf.mxu0 }
 0x7aa   :  { %v4303_v9 = vadd.f32 %v4302_v6, %v4301_v3 }
 0x7ac   :  { %v3697_v13 = vadd.f32 %v4303_v9, %v4223_v4 }
 0x7ae   :  { %4939 = vlog2.f32 %v3697_v13 }
 0x7bb   :  { %v4940_v14 = vpop.eup %4939 }
 0x7bc   :  { %v3701_v5 = vmul.f32 0.6931472, %v4940_v14 }
 0x7be   :  { %v3702_v16 = vadd.f32 %v3701_v5, %v3584_v47 }
 0x7c0   :  { %4224 = vmatmul.mubr.msk.f32.vlgmr.msra.gmra.mxu1 %vm1956_vm9, %v3702_v16 }
 0x880   :  { %v3776_v17 = vpop.f32.mrf.mxu1 }
 0x881   :  { %v3781_v15 = vsub.f32 %v5374_v24, %v3776_v17 }
 0x882   :  { %v3778_v18 = vpop.f32.mrf.mxu1 }
 0x883   :  { %3783 = vst [vmem:[%s5491_s18] sm:$0xff] %v3781_v15  ;;  %v3782_v19 = vsub.f32 %v5376_v25, %v3778_v18 }
 0x885   :  { %3784 = vst [vmem:[%s5491_s18 + $0x8] sm:$0xff] %v3782_v19 }
 0x886   :  { %3793 = vsyncpa [#allocation3], 1 }
 0x887   :  { %3794 = vsyncpa [#allocation5], 1 }
 0x888   :  { %3795 = vsyncpa [#allocation8], 1 }

</bundles_post_ra>
